<compile_context>
chip_gen: v6e
topology: v6e:2x2x1
jax: 0.10.0
libtpu: 0.0.40
codegen_flags: <defaults>
</compile_context>

<pallas_src>
import functools
import math

import jax
import jax.numpy as jnp
from jax import lax
from jax.experimental import pallas as pl
from jax.experimental.pallas import tpu as pltpu

# ----------------------------------------------------------------------------
# Small "roberta-large"-structured config (same wiring, tiny sizes).
# ----------------------------------------------------------------------------
CFG = dict(
    vocab_size=100,
    hidden=32,
    heads=4,
    layers=2,
    intermediate=64,
    max_position=64,
    pad_token_id=1,      # RoBERTa padding_idx
    num_labels=3,        # MNLI: contradiction / neutral / entailment
    eps=1e-5,            # layer_norm_eps
)

_SQRT_2_OVER_PI = math.sqrt(2.0 / math.pi)


# ----------------------------------------------------------------------------
# In-kernel math helpers
# ----------------------------------------------------------------------------
def _gelu_tanh(y):
    # tanh-approx GELU (== jax.nn.gelu(approximate=True)); tanh uses the EUP slot.
    # TODO(synk): torch.nn.functional.gelu defaults to the exact erf form; the
    # tanh approximation differs by O(1e-3) if bit-parity with torch is needed.
    return 0.5 * y * (1.0 + jnp.tanh(_SQRT_2_OVER_PI * (y + 0.044715 * y * y * y)))


def _ln(x, g, b, eps):
    mu = jnp.mean(x, axis=-1, keepdims=True)
    var = jnp.mean(jnp.square(x - mu), axis=-1, keepdims=True)
    return (x - mu) * lax.rsqrt(var + eps) * g + b


def _softmax_rows(s, approx):
    m = jnp.max(s, axis=-1, keepdims=True)
    p = jnp.exp(s - m)
    return p * pl.reciprocal(jnp.sum(p, axis=-1, keepdims=True), approx=approx)


# ----------------------------------------------------------------------------
# The single fused kernel: grid over layers, activations resident in VMEM.
# ----------------------------------------------------------------------------
def _fused_roberta_kernel(
    x0_ref, mask_ref, embg_ref, embb_ref,
    wqkv_ref, bqkv_ref, wo_ref, bo_ref, ln1g_ref, ln1b_ref,
    wi_ref, bi_ref, wf_ref, bf_ref, ln2g_ref, ln2b_ref,
    wd_ref, bd_ref, wout_ref, bout_ref,
    o_ref, x_scr,
    *, B, S, heads, eps,
):
    l = pl.program_id(0)
    H = x_scr.shape[1]
    Dh = H // heads

    # --- layer 0: embedding layernorm into the resident activation slab ---
    @pl.when(l == 0)
    def _():
        x_scr[...] = _ln(x0_ref[...].astype(jnp.float32),
                         embg_ref[...], embb_ref[...], eps)

    x = x_scr[...]                       # (B*S, H) f32, resident across layers
    add_mask = mask_ref[...]             # (B*S, B*S) block-diag-over-batch, -1e9 fill

    # --- fused QKV projection: one (B*S, H) x (H, 3H) MXU matmul
    #     (1/sqrt(Dh) scale already folded into the Q columns at init) ---
    qkv = jnp.dot(x, wqkv_ref[0], preferred_element_type=jnp.float32) + bqkv_ref[0]
    q = qkv[:, 0:H]
    k = qkv[:, H:2 * H]
    v = qkv[:, 2 * H:3 * H]

    # --- multi-head self-attention over the flattened token axis; heads
    #     unrolled with static Dh-wide lane slices; output projection folded
    #     into the per-head accumulation so no (B*S, Dh) tensor is stored ---
    wo = wo_ref[0]
    attn = jnp.zeros_like(x)
    for h in range(heads):
        lo, hi = h * Dh, (h + 1) * Dh
        s = lax.dot_general(q[:, lo:hi], k[:, lo:hi], (((1,), (1,)), ((), ())),
                            preferred_element_type=jnp.float32)       # (BS, BS)
        p = _softmax_rows(s + add_mask, approx=True)
        ctx = jnp.dot(p, v[:, lo:hi], preferred_element_type=jnp.float32)
        attn = attn + jnp.dot(ctx, wo[lo:hi, :],
                              preferred_element_type=jnp.float32)     # (BS, H)
    attn = attn + bo_ref[0]

    # --- residual + LN1, GELU FFN, residual + LN2 ---
    x1 = _ln(attn + x, ln1g_ref[0], ln1b_ref[0], eps)
    inter = _gelu_tanh(
        jnp.dot(x1, wi_ref[0], preferred_element_type=jnp.float32) + bi_ref[0])
    ff = jnp.dot(inter, wf_ref[0], preferred_element_type=jnp.float32) + bf_ref[0]
    x2 = _ln(ff + x1, ln2g_ref[0], ln2b_ref[0], eps)
    x_scr[...] = x2

    # --- last layer: classification head on the <s> token of each sequence ---
    @pl.when(l == pl.num_programs(0) - 1)
    def _():
        feats = jnp.concatenate([x2[b * S:b * S + 1, :] for b in range(B)],
                                axis=0)                                # (B, H)
        hcls = jnp.tanh(jnp.dot(feats, wd_ref[...],
                                preferred_element_type=jnp.float32) + bd_ref[...])
        logits = jnp.dot(hcls, wout_ref[...],
                         preferred_element_type=jnp.float32) + bout_ref[...]
        # exact reciprocal for the externally visible probabilities
        o_ref[...] = _softmax_rows(logits, approx=False).astype(o_ref.dtype)


def _const_spec(shape):
    nd = len(shape)
    return pl.BlockSpec(tuple(shape), lambda l, nd=nd: (0,) * nd)


def _layer_spec(shape):
    nd = len(shape)
    blk = (1,) + tuple(shape[1:])
    return pl.BlockSpec(blk, lambda l, nd=nd: (l,) + (0,) * (nd - 1))


def fused_roberta(x0, mask_full, p, cfg, *, B, S):
    H = cfg["hidden"]
    L, nL = cfg["layers"], cfg["num_labels"]

    kernel = functools.partial(_fused_roberta_kernel, B=B, S=S,
                               heads=cfg["heads"], eps=cfg["eps"])
    args = (x0, mask_full, p["emb_ln_g"], p["emb_ln_b"],
            p["wqkv"], p["bqkv"], p["wo"], p["bo"], p["ln1_g"], p["ln1_b"],
            p["wi"], p["bi"], p["wf"], p["bf"], p["ln2_g"], p["ln2_b"],
            p["cls_dense_w"], p["cls_dense_b"], p["cls_out_w"], p["cls_out_b"])

    in_specs = [
        _const_spec(x0.shape),               # embeddings (pre-LN)
        _const_spec(mask_full.shape),        # additive attention mask
        _const_spec(p["emb_ln_g"].shape),
        _const_spec(p["emb_ln_b"].shape),
        _layer_spec(p["wqkv"].shape),        # (L, H, 3H)
        _layer_spec(p["bqkv"].shape),        # (L, 1, 3H)
        _layer_spec(p["wo"].shape),
        _layer_spec(p["bo"].shape),
        _layer_spec(p["ln1_g"].shape),
        _layer_spec(p["ln1_b"].shape),
        _layer_spec(p["wi"].shape),
        _layer_spec(p["bi"].shape),
        _layer_spec(p["wf"].shape),
        _layer_spec(p["bf"].shape),
        _layer_spec(p["ln2_g"].shape),
        _layer_spec(p["ln2_b"].shape),
        _const_spec(p["cls_dense_w"].shape),
        _const_spec(p["cls_dense_b"].shape),
        _const_spec(p["cls_out_w"].shape),
        _const_spec(p["cls_out_b"].shape),
    ]

    return pl.pallas_call(
        kernel,
        out_shape=jax.ShapeDtypeStruct((B, nL), jnp.float32),
        grid=(L,),
        in_specs=in_specs,
        out_specs=pl.BlockSpec((B, nL), lambda l: (0, 0)),
        scratch_shapes=[pltpu.VMEM((B * S, H), jnp.float32)],
        compiler_params=pltpu.CompilerParams(dimension_semantics=("arbitrary",)),
    )(*args)


# ----------------------------------------------------------------------------
# Deterministic parameter init (structure of RobertaForSequenceClassification),
# with per-layer weights stacked along a leading layer axis for the fused call.
# ----------------------------------------------------------------------------
def init_params(key, cfg):
    H, I, V = cfg["hidden"], cfg["intermediate"], cfg["vocab_size"]
    L, nH, nL = cfg["layers"], cfg["heads"], cfg["num_labels"]
    scale = 1.0 / math.sqrt(H // nH)

    def nxt():
        nonlocal key
        key, sub = jax.random.split(key)
        return sub

    def dense(k_in, k_out):
        return (0.02 * jax.random.normal(nxt(), (k_in, k_out), jnp.float32),
                jnp.zeros((k_out,), jnp.float32))

    params = {}
    we = 0.02 * jax.random.normal(nxt(), (V, H), jnp.float32)
    params["word_emb"] = we.at[cfg["pad_token_id"]].set(0.0)       # padding_idx row = 0
    pe = 0.02 * jax.random.normal(nxt(), (cfg["max_position"], H), jnp.float32)
    params["pos_emb"] = pe.at[cfg["pad_token_id"]].set(0.0)        # padding_idx row = 0
    params["type_emb"] = 0.02 * jax.random.normal(nxt(), (1, H), jnp.float32)
    params["emb_ln_g"] = jnp.ones((1, H), jnp.float32)
    params["emb_ln_b"] = jnp.zeros((1, H), jnp.float32)

    acc = {k: [] for k in ("wqkv", "bqkv", "wo", "bo", "ln1_g", "ln1_b",
                           "wi", "bi", "wf", "bf", "ln2_g", "ln2_b")}
    for _ in range(L):
        wq, bq = dense(H, H)
        wk, bk = dense(H, H)
        wv, bv = dense(H, H)
        # QKV fused into one (H, 3H) weight; attention 1/sqrt(Dh) scale folded
        # into the Q columns (and Q bias) at init -> zero runtime cost.
        acc["wqkv"].append(jnp.concatenate([wq * scale, wk, wv], axis=1))
        acc["bqkv"].append(jnp.concatenate([bq * scale, bk, bv], axis=0).reshape(1, 3 * H))
        wo, bo = dense(H, H)
        acc["wo"].append(wo)
        acc["bo"].append(bo.reshape(1, H))
        acc["ln1_g"].append(jnp.ones((1, H), jnp.float32))
        acc["ln1_b"].append(jnp.zeros((1, H), jnp.float32))
        wi, bi = dense(H, I)
        acc["wi"].append(wi)
        acc["bi"].append(bi.reshape(1, I))
        wf, bf = dense(I, H)
        acc["wf"].append(wf)
        acc["bf"].append(bf.reshape(1, H))
        acc["ln2_g"].append(jnp.ones((1, H), jnp.float32))
        acc["ln2_b"].append(jnp.zeros((1, H), jnp.float32))
    for k, v in acc.items():
        params[k] = jnp.stack(v, axis=0)

    wd, bd = dense(H, H)
    params["cls_dense_w"], params["cls_dense_b"] = wd, bd.reshape(1, H)
    wout, bout = dense(H, nL)
    params["cls_out_w"], params["cls_out_b"] = wout, bout.reshape(1, nL)
    return params


# ----------------------------------------------------------------------------
# Forward pass == roberta_mnli_typing.forward(input_ids, attention_mask)
# ----------------------------------------------------------------------------
def forward(params, input_ids, attention_mask, cfg):
    B, S = input_ids.shape
    H = cfg["hidden"]
    pad = cfg["pad_token_id"]

    # --- embeddings: table gathers + RoBERTa position ids (cheap JAX glue) ---
    tok_mask = (input_ids != pad).astype(jnp.int32)
    position_ids = jnp.cumsum(tok_mask, axis=1) * tok_mask + pad   # RoBERTa position ids
    hidden = (jnp.take(params["word_emb"], input_ids, axis=0)
              + jnp.take(params["pos_emb"], position_ids, axis=0)
              + params["type_emb"][0][None, None, :])
    x0 = hidden.reshape(B * S, H).astype(jnp.float32)

    # --- additive attention mask over the flattened (B*S) token axis:
    #     block-diagonal over batch + padded keys masked; large finite negative
    #     (-1e9) instead of finfo(f32).min so fully-masked entries never hit
    #     exp(-inf - (-inf)) -> NaN. ---
    bm = attention_mask.astype(jnp.float32)                                  # (B, S)
    allow = jnp.einsum("ab,bk->abk", jnp.eye(B, dtype=jnp.float32), bm)      # (B, B, Sk)
    allow = jnp.broadcast_to(allow[:, None, :, :], (B, S, B, S))
    mask_full = ((1.0 - allow) * -1e9).reshape(B * S, B * S)

    # Single fused pallas_call: embedding LN + all encoder layers + head + softmax.
    return fused_roberta(x0, mask_full, params, cfg, B=B, S=S)


if __name__ == "__main__":
    key = jax.random.PRNGKey(0)
    pkey, ikey = jax.random.split(key)
    params = init_params(pkey, CFG)

    B, S = 2, 8
    input_ids = jax.random.randint(ikey, (B, S), 3, CFG["vocab_size"], dtype=jnp.int32)
    attention_mask = jnp.array([[1, 1, 1, 1, 1, 1, 1, 1],
                                [1, 1, 1, 1, 1, 1, 0, 0]], dtype=jnp.int32)
    # padded positions hold the pad token, as a tokenizer would produce
    input_ids = jnp.where(attention_mask == 1, input_ids, CFG["pad_token_id"])

    fwd = jax.jit(functools.partial(forward, cfg=CFG))
    probs = jax.block_until_ready(fwd(params, input_ids, attention_mask))

    assert probs.shape == (B, CFG["num_labels"])
    assert bool(jnp.all(jnp.isfinite(probs)))
    assert bool(jnp.allclose(jnp.sum(probs, axis=-1), 1.0, atol=1e-4))
    print("KERNEL_OK")
</pallas_src>

<mosaic_0001>
module attributes {stable_mosaic.version = 11 : i64} {
  func.func @_fused_roberta_kernel(%arg0: i32, %arg1: memref<16x32xf32, #tpu.memory_space<vmem>>, %arg2: memref<16x16xf32, #tpu.memory_space<vmem>>, %arg3: memref<1x32xf32, #tpu.memory_space<vmem>>, %arg4: memref<1x32xf32, #tpu.memory_space<vmem>>, %arg5: memref<1x32x96xf32, #tpu.memory_space<vmem>>, %arg6: memref<1x1x96xf32, #tpu.memory_space<vmem>>, %arg7: memref<1x32x32xf32, #tpu.memory_space<vmem>>, %arg8: memref<1x1x32xf32, #tpu.memory_space<vmem>>, %arg9: memref<1x1x32xf32, #tpu.memory_space<vmem>>, %arg10: memref<1x1x32xf32, #tpu.memory_space<vmem>>, %arg11: memref<1x32x64xf32, #tpu.memory_space<vmem>>, %arg12: memref<1x1x64xf32, #tpu.memory_space<vmem>>, %arg13: memref<1x64x32xf32, #tpu.memory_space<vmem>>, %arg14: memref<1x1x32xf32, #tpu.memory_space<vmem>>, %arg15: memref<1x1x32xf32, #tpu.memory_space<vmem>>, %arg16: memref<1x1x32xf32, #tpu.memory_space<vmem>>, %arg17: memref<32x32xf32, #tpu.memory_space<vmem>>, %arg18: memref<1x32xf32, #tpu.memory_space<vmem>>, %arg19: memref<32x3xf32, #tpu.memory_space<vmem>>, %arg20: memref<1x3xf32, #tpu.memory_space<vmem>>, %arg21: memref<2x3xf32, #tpu.memory_space<vmem>>, %arg22: memref<16x32xf32, #tpu.memory_space<vmem>>) attributes {dimension_semantics = [#tpu.dimension_semantics<arbitrary>], iteration_bounds = array<i64: 2>, scalar_prefetch = 0 : i64, scratch_operands = 1 : i64, tpu.core_type = #tpu.core_type<tc>, window_params = [{pipeline_mode = #tpu.pipeline_mode<synchronous>, transform_indices = @transform_0, window_bounds = array<i64: 16, 32>}, {pipeline_mode = #tpu.pipeline_mode<synchronous>, transform_indices = @transform_1, window_bounds = array<i64: 16, 16>}, {pipeline_mode = #tpu.pipeline_mode<synchronous>, transform_indices = @transform_2, window_bounds = array<i64: 1, 32>}, {pipeline_mode = #tpu.pipeline_mode<synchronous>, transform_indices = @transform_3, window_bounds = array<i64: 1, 32>}, {transform_indices = @transform_4, window_bounds = array<i64: 1, 32, 96>}, {transform_indices = @transform_5, window_bounds = array<i64: 1, 1, 96>}, {transform_indices = @transform_6, window_bounds = array<i64: 1, 32, 32>}, {transform_indices = @transform_7, window_bounds = array<i64: 1, 1, 32>}, {transform_indices = @transform_8, window_bounds = array<i64: 1, 1, 32>}, {transform_indices = @transform_9, window_bounds = array<i64: 1, 1, 32>}, {transform_indices = @transform_10, window_bounds = array<i64: 1, 32, 64>}, {transform_indices = @transform_11, window_bounds = array<i64: 1, 1, 64>}, {transform_indices = @transform_12, window_bounds = array<i64: 1, 64, 32>}, {transform_indices = @transform_13, window_bounds = array<i64: 1, 1, 32>}, {transform_indices = @transform_14, window_bounds = array<i64: 1, 1, 32>}, {transform_indices = @transform_15, window_bounds = array<i64: 1, 1, 32>}, {pipeline_mode = #tpu.pipeline_mode<synchronous>, transform_indices = @transform_16, window_bounds = array<i64: 32, 32>}, {pipeline_mode = #tpu.pipeline_mode<synchronous>, transform_indices = @transform_17, window_bounds = array<i64: 1, 32>}, {pipeline_mode = #tpu.pipeline_mode<synchronous>, transform_indices = @transform_18, window_bounds = array<i64: 32, 3>}, {pipeline_mode = #tpu.pipeline_mode<synchronous>, transform_indices = @transform_19, window_bounds = array<i64: 1, 3>}, {pipeline_mode = #tpu.pipeline_mode<synchronous>, transform_indices = @transform_20, window_bounds = array<i64: 2, 3>}]} {
    %c0_i32 = arith.constant 0 : i32
    %0 = arith.cmpi eq, %arg0, %c0_i32 : i32
    %1 = arith.extui %0 : i1 to i32
    %c0_i32_0 = arith.constant 0 : i32
    %2 = arith.cmpi ne, %1, %c0_i32_0 : i32
    scf.if %2 {
      %c0_80 = arith.constant 0 : index
      %c0_81 = arith.constant 0 : index
      %183 = vector.load %arg1[%c0_80, %c0_81] : memref<16x32xf32, #tpu.memory_space<vmem>>, vector<16x32xf32>
      %c0_82 = arith.constant 0 : index
      %c0_83 = arith.constant 0 : index
      %184 = vector.load %arg3[%c0_82, %c0_83] : memref<1x32xf32, #tpu.memory_space<vmem>>, vector<1x32xf32>
      %c0_84 = arith.constant 0 : index
      %c0_85 = arith.constant 0 : index
      %185 = vector.load %arg4[%c0_84, %c0_85] : memref<1x32xf32, #tpu.memory_space<vmem>>, vector<1x32xf32>
      %cst_86 = arith.constant dense<0.000000e+00> : vector<16xf32>
      %186 = vector.multi_reduction <add>, %183, %cst_86 [1] : vector<16x32xf32> to vector<16xf32>
      %187 = vector.shape_cast %186 : vector<16xf32> to vector<16x1xf32>
      %cst_87 = arith.constant 3.200000e+01 : f32
      %188 = vector.broadcast %cst_87 : f32 to vector<16x1xf32>
      %189 = arith.divf %187, %188 : vector<16x1xf32>
      %190 = vector.broadcast %189 : vector<16x1xf32> to vector<16x32xf32>
      %191 = arith.subf %183, %190 : vector<16x32xf32>
      %192 = arith.mulf %191, %191 : vector<16x32xf32>
      %cst_88 = arith.constant dense<0.000000e+00> : vector<16xf32>
      %193 = vector.multi_reduction <add>, %192, %cst_88 [1] : vector<16x32xf32> to vector<16xf32>
      %194 = vector.shape_cast %193 : vector<16xf32> to vector<16x1xf32>
      %cst_89 = arith.constant 3.200000e+01 : f32
      %195 = vector.broadcast %cst_89 : f32 to vector<16x1xf32>
      %196 = arith.divf %194, %195 : vector<16x1xf32>
      %197 = vector.broadcast %189 : vector<16x1xf32> to vector<16x32xf32>
      %198 = arith.subf %183, %197 : vector<16x32xf32>
      %cst_90 = arith.constant 9.99999974E-6 : f32
      %199 = vector.broadcast %cst_90 : f32 to vector<16x1xf32>
      %200 = arith.addf %196, %199 : vector<16x1xf32>
      %201 = math.rsqrt %200 : vector<16x1xf32>
      %202 = vector.broadcast %201 : vector<16x1xf32> to vector<16x32xf32>
      %203 = arith.mulf %198, %202 : vector<16x32xf32>
      %204 = vector.broadcast %184 : vector<1x32xf32> to vector<16x32xf32>
      %205 = arith.mulf %203, %204 : vector<16x32xf32>
      %206 = vector.broadcast %185 : vector<1x32xf32> to vector<16x32xf32>
      %207 = arith.addf %205, %206 : vector<16x32xf32>
      %c0_91 = arith.constant 0 : index
      %c0_92 = arith.constant 0 : index
      %208 = vector.load %arg22[%c0_91, %c0_92] : memref<16x32xf32, #tpu.memory_space<vmem>>, vector<16x32xf32>
      tpu.vector_store %arg22[%c0_91, %c0_92], %207 {strides = array<i32>} : memref<16x32xf32, #tpu.memory_space<vmem>>, vector<16x32xf32>,
    } else {
    }
    %c0 = arith.constant 0 : index
    %c0_1 = arith.constant 0 : index
    %3 = vector.load %arg22[%c0, %c0_1] : memref<16x32xf32, #tpu.memory_space<vmem>>, vector<16x32xf32>
    %c0_2 = arith.constant 0 : index
    %c0_3 = arith.constant 0 : index
    %4 = vector.load %arg2[%c0_2, %c0_3] : memref<16x16xf32, #tpu.memory_space<vmem>>, vector<16x16xf32>
    %c0_4 = arith.constant 0 : index
    %c0_5 = arith.constant 0 : index
    %c0_6 = arith.constant 0 : index
    %5 = vector.load %arg5[%c0_4, %c0_5, %c0_6] : memref<1x32x96xf32, #tpu.memory_space<vmem>>, vector<1x32x96xf32>
    %6 = vector.shape_cast %5 : vector<1x32x96xf32> to vector<32x96xf32>
    %cst = arith.constant dense<0.000000e+00> : vector<16x96xf32>
    %7 = tpu.matmul %3, %6, %cst {dimension_numbers = #tpu.dot_dimension_numbers<[1], [0], [0], [1], [0, 0, 1, 1], [], []>} : vector<16x32xf32>, vector<32x96xf32>, vector<16x96xf32> -> vector<16x96xf32>
    %c0_7 = arith.constant 0 : index
    %c0_8 = arith.constant 0 : index
    %c0_9 = arith.constant 0 : index
    %8 = vector.load %arg6[%c0_7, %c0_8, %c0_9] : memref<1x1x96xf32, #tpu.memory_space<vmem>>, vector<1x1x96xf32>
    %9 = vector.shape_cast %8 : vector<1x1x96xf32> to vector<1x96xf32>
    %10 = vector.broadcast %9 : vector<1x96xf32> to vector<16x96xf32>
    %11 = arith.addf %7, %10 : vector<16x96xf32>
    %12 = vector.extract_strided_slice %11 {offsets = [0, 0], sizes = [16, 32], strides = [1, 1]} : vector<16x96xf32> to vector<16x32xf32>
    %13 = vector.extract_strided_slice %11 {offsets = [0, 32], sizes = [16, 32], strides = [1, 1]} : vector<16x96xf32> to vector<16x32xf32>
    %14 = vector.extract_strided_slice %11 {offsets = [0, 64], sizes = [16, 32], strides = [1, 1]} : vector<16x96xf32> to vector<16x32xf32>
    %c0_10 = arith.constant 0 : index
    %c0_11 = arith.constant 0 : index
    %c0_12 = arith.constant 0 : index
    %15 = vector.load %arg7[%c0_10, %c0_11, %c0_12] : memref<1x32x32xf32, #tpu.memory_space<vmem>>, vector<1x32x32xf32>
    %16 = vector.shape_cast %15 : vector<1x32x32xf32> to vector<32x32xf32>
    %cst_13 = arith.constant 0.000000e+00 : f32
    %17 = vector.broadcast %cst_13 : f32 to vector<16x32xf32>
    %18 = vector.extract_strided_slice %12 {offsets = [0, 0], sizes = [16, 8], strides = [1, 1]} : vector<16x32xf32> to vector<16x8xf32>
    %19 = vector.extract_strided_slice %13 {offsets = [0, 0], sizes = [16, 8], strides = [1, 1]} : vector<16x32xf32> to vector<16x8xf32>
    %cst_14 = arith.constant dense<0.000000e+00> : vector<16x16xf32>
    %20 = tpu.matmul %18, %19, %cst_14 {dimension_numbers = #tpu.dot_dimension_numbers<[1], [1], [0], [0], [0, 0, 1, 0], [], []>} : vector<16x8xf32>, vector<16x8xf32>, vector<16x16xf32> -> vector<16x16xf32>
    %21 = arith.addf %20, %4 : vector<16x16xf32>
    %cst_15 = arith.constant dense<0xFF800000> : vector<16xf32>
    %22 = vector.multi_reduction <maximumf>, %21, %cst_15 [1] : vector<16x16xf32> to vector<16xf32>
    %23 = vector.shape_cast %22 : vector<16xf32> to vector<16x1xf32>
    %24 = vector.broadcast %23 : vector<16x1xf32> to vector<16x16xf32>
    %25 = arith.subf %21, %24 : vector<16x16xf32>
    %26 = math.exp %25 : vector<16x16xf32>
    %cst_16 = arith.constant dense<0.000000e+00> : vector<16xf32>
    %27 = vector.multi_reduction <add>, %26, %cst_16 [1] : vector<16x16xf32> to vector<16xf32>
    %28 = vector.shape_cast %27 : vector<16xf32> to vector<16x1xf32>
    %29 = tpu.reciprocal %28 {approx = true} : vector<16x1xf32> -> vector<16x1xf32>
    %30 = vector.broadcast %29 : vector<16x1xf32> to vector<16x16xf32>
    %31 = arith.mulf %26, %30 : vector<16x16xf32>
    %32 = vector.extract_strided_slice %14 {offsets = [0, 0], sizes = [16, 8], strides = [1, 1]} : vector<16x32xf32> to vector<16x8xf32>
    %cst_17 = arith.constant dense<0.000000e+00> : vector<16x8xf32>
    %33 = tpu.matmul %31, %32, %cst_17 {dimension_numbers = #tpu.dot_dimension_numbers<[1], [0], [0], [1], [0, 0, 1, 1], [], []>} : vector<16x16xf32>, vector<16x8xf32>, vector<16x8xf32> -> vector<16x8xf32>
    %34 = vector.extract_strided_slice %16 {offsets = [0, 0], sizes = [8, 32], strides = [1, 1]} : vector<32x32xf32> to vector<8x32xf32>
    %cst_18 = arith.constant dense<0.000000e+00> : vector<16x32xf32>
    %35 = tpu.matmul %33, %34, %cst_18 {dimension_numbers = #tpu.dot_dimension_numbers<[1], [0], [0], [1], [0, 0, 1, 1], [], []>} : vector<16x8xf32>, vector<8x32xf32>, vector<16x32xf32> -> vector<16x32xf32>
    %36 = arith.addf %17, %35 : vector<16x32xf32>
    %37 = vector.extract_strided_slice %12 {offsets = [0, 8], sizes = [16, 8], strides = [1, 1]} : vector<16x32xf32> to vector<16x8xf32>
    %38 = vector.extract_strided_slice %13 {offsets = [0, 8], sizes = [16, 8], strides = [1, 1]} : vector<16x32xf32> to vector<16x8xf32>
    %cst_19 = arith.constant dense<0.000000e+00> : vector<16x16xf32>
    %39 = tpu.matmul %37, %38, %cst_19 {dimension_numbers = #tpu.dot_dimension_numbers<[1], [1], [0], [0], [0, 0, 1, 0], [], []>} : vector<16x8xf32>, vector<16x8xf32>, vector<16x16xf32> -> vector<16x16xf32>
    %40 = arith.addf %39, %4 : vector<16x16xf32>
    %cst_20 = arith.constant dense<0xFF800000> : vector<16xf32>
    %41 = vector.multi_reduction <maximumf>, %40, %cst_20 [1] : vector<16x16xf32> to vector<16xf32>
    %42 = vector.shape_cast %41 : vector<16xf32> to vector<16x1xf32>
    %43 = vector.broadcast %42 : vector<16x1xf32> to vector<16x16xf32>
    %44 = arith.subf %40, %43 : vector<16x16xf32>
    %45 = math.exp %44 : vector<16x16xf32>
    %cst_21 = arith.constant dense<0.000000e+00> : vector<16xf32>
    %46 = vector.multi_reduction <add>, %45, %cst_21 [1] : vector<16x16xf32> to vector<16xf32>
    %47 = vector.shape_cast %46 : vector<16xf32> to vector<16x1xf32>
    %48 = tpu.reciprocal %47 {approx = true} : vector<16x1xf32> -> vector<16x1xf32>
    %49 = vector.broadcast %48 : vector<16x1xf32> to vector<16x16xf32>
    %50 = arith.mulf %45, %49 : vector<16x16xf32>
    %51 = vector.extract_strided_slice %14 {offsets = [0, 8], sizes = [16, 8], strides = [1, 1]} : vector<16x32xf32> to vector<16x8xf32>
    %cst_22 = arith.constant dense<0.000000e+00> : vector<16x8xf32>
    %52 = tpu.matmul %50, %51, %cst_22 {dimension_numbers = #tpu.dot_dimension_numbers<[1], [0], [0], [1], [0, 0, 1, 1], [], []>} : vector<16x16xf32>, vector<16x8xf32>, vector<16x8xf32> -> vector<16x8xf32>
    %53 = vector.extract_strided_slice %16 {offsets = [8, 0], sizes = [8, 32], strides = [1, 1]} : vector<32x32xf32> to vector<8x32xf32>
    %cst_23 = arith.constant dense<0.000000e+00> : vector<16x32xf32>
    %54 = tpu.matmul %52, %53, %cst_23 {dimension_numbers = #tpu.dot_dimension_numbers<[1], [0], [0], [1], [0, 0, 1, 1], [], []>} : vector<16x8xf32>, vector<8x32xf32>, vector<16x32xf32> -> vector<16x32xf32>
    %55 = arith.addf %36, %54 : vector<16x32xf32>
    %56 = vector.extract_strided_slice %12 {offsets = [0, 16], sizes = [16, 8], strides = [1, 1]} : vector<16x32xf32> to vector<16x8xf32>
    %57 = vector.extract_strided_slice %13 {offsets = [0, 16], sizes = [16, 8], strides = [1, 1]} : vector<16x32xf32> to vector<16x8xf32>
    %cst_24 = arith.constant dense<0.000000e+00> : vector<16x16xf32>
    %58 = tpu.matmul %56, %57, %cst_24 {dimension_numbers = #tpu.dot_dimension_numbers<[1], [1], [0], [0], [0, 0, 1, 0], [], []>} : vector<16x8xf32>, vector<16x8xf32>, vector<16x16xf32> -> vector<16x16xf32>
    %59 = arith.addf %58, %4 : vector<16x16xf32>
    %cst_25 = arith.constant dense<0xFF800000> : vector<16xf32>
    %60 = vector.multi_reduction <maximumf>, %59, %cst_25 [1] : vector<16x16xf32> to vector<16xf32>
    %61 = vector.shape_cast %60 : vector<16xf32> to vector<16x1xf32>
    %62 = vector.broadcast %61 : vector<16x1xf32> to vector<16x16xf32>
    %63 = arith.subf %59, %62 : vector<16x16xf32>
    %64 = math.exp %63 : vector<16x16xf32>
    %cst_26 = arith.constant dense<0.000000e+00> : vector<16xf32>
    %65 = vector.multi_reduction <add>, %64, %cst_26 [1] : vector<16x16xf32> to vector<16xf32>
    %66 = vector.shape_cast %65 : vector<16xf32> to vector<16x1xf32>
    %67 = tpu.reciprocal %66 {approx = true} : vector<16x1xf32> -> vector<16x1xf32>
    %68 = vector.broadcast %67 : vector<16x1xf32> to vector<16x16xf32>
    %69 = arith.mulf %64, %68 : vector<16x16xf32>
    %70 = vector.extract_strided_slice %14 {offsets = [0, 16], sizes = [16, 8], strides = [1, 1]} : vector<16x32xf32> to vector<16x8xf32>
    %cst_27 = arith.constant dense<0.000000e+00> : vector<16x8xf32>
    %71 = tpu.matmul %69, %70, %cst_27 {dimension_numbers = #tpu.dot_dimension_numbers<[1], [0], [0], [1], [0, 0, 1, 1], [], []>} : vector<16x16xf32>, vector<16x8xf32>, vector<16x8xf32> -> vector<16x8xf32>
    %72 = vector.extract_strided_slice %16 {offsets = [16, 0], sizes = [8, 32], strides = [1, 1]} : vector<32x32xf32> to vector<8x32xf32>
    %cst_28 = arith.constant dense<0.000000e+00> : vector<16x32xf32>
    %73 = tpu.matmul %71, %72, %cst_28 {dimension_numbers = #tpu.dot_dimension_numbers<[1], [0], [0], [1], [0, 0, 1, 1], [], []>} : vector<16x8xf32>, vector<8x32xf32>, vector<16x32xf32> -> vector<16x32xf32>
    %74 = arith.addf %55, %73 : vector<16x32xf32>
    %75 = vector.extract_strided_slice %12 {offsets = [0, 24], sizes = [16, 8], strides = [1, 1]} : vector<16x32xf32> to vector<16x8xf32>
    %76 = vector.extract_strided_slice %13 {offsets = [0, 24], sizes = [16, 8], strides = [1, 1]} : vector<16x32xf32> to vector<16x8xf32>
    %cst_29 = arith.constant dense<0.000000e+00> : vector<16x16xf32>
    %77 = tpu.matmul %75, %76, %cst_29 {dimension_numbers = #tpu.dot_dimension_numbers<[1], [1], [0], [0], [0, 0, 1, 0], [], []>} : vector<16x8xf32>, vector<16x8xf32>, vector<16x16xf32> -> vector<16x16xf32>
    %78 = arith.addf %77, %4 : vector<16x16xf32>
    %cst_30 = arith.constant dense<0xFF800000> : vector<16xf32>
    %79 = vector.multi_reduction <maximumf>, %78, %cst_30 [1] : vector<16x16xf32> to vector<16xf32>
    %80 = vector.shape_cast %79 : vector<16xf32> to vector<16x1xf32>
    %81 = vector.broadcast %80 : vector<16x1xf32> to vector<16x16xf32>
    %82 = arith.subf %78, %81 : vector<16x16xf32>
    %83 = math.exp %82 : vector<16x16xf32>
    %cst_31 = arith.constant dense<0.000000e+00> : vector<16xf32>
    %84 = vector.multi_reduction <add>, %83, %cst_31 [1] : vector<16x16xf32> to vector<16xf32>
    %85 = vector.shape_cast %84 : vector<16xf32> to vector<16x1xf32>
    %86 = tpu.reciprocal %85 {approx = true} : vector<16x1xf32> -> vector<16x1xf32>
    %87 = vector.broadcast %86 : vector<16x1xf32> to vector<16x16xf32>
    %88 = arith.mulf %83, %87 : vector<16x16xf32>
    %89 = vector.extract_strided_slice %14 {offsets = [0, 24], sizes = [16, 8], strides = [1, 1]} : vector<16x32xf32> to vector<16x8xf32>
    %cst_32 = arith.constant dense<0.000000e+00> : vector<16x8xf32>
    %90 = tpu.matmul %88, %89, %cst_32 {dimension_numbers = #tpu.dot_dimension_numbers<[1], [0], [0], [1], [0, 0, 1, 1], [], []>} : vector<16x16xf32>, vector<16x8xf32>, vector<16x8xf32> -> vector<16x8xf32>
    %91 = vector.extract_strided_slice %16 {offsets = [24, 0], sizes = [8, 32], strides = [1, 1]} : vector<32x32xf32> to vector<8x32xf32>
    %cst_33 = arith.constant dense<0.000000e+00> : vector<16x32xf32>
    %92 = tpu.matmul %90, %91, %cst_33 {dimension_numbers = #tpu.dot_dimension_numbers<[1], [0], [0], [1], [0, 0, 1, 1], [], []>} : vector<16x8xf32>, vector<8x32xf32>, vector<16x32xf32> -> vector<16x32xf32>
    %93 = arith.addf %74, %92 : vector<16x32xf32>
    %c0_34 = arith.constant 0 : index
    %c0_35 = arith.constant 0 : index
    %c0_36 = arith.constant 0 : index
    %94 = vector.load %arg8[%c0_34, %c0_35, %c0_36] : memref<1x1x32xf32, #tpu.memory_space<vmem>>, vector<1x1x32xf32>
    %95 = vector.shape_cast %94 : vector<1x1x32xf32> to vector<1x32xf32>
    %96 = vector.broadcast %95 : vector<1x32xf32> to vector<16x32xf32>
    %97 = arith.addf %93, %96 : vector<16x32xf32>
    %98 = arith.addf %97, %3 : vector<16x32xf32>
    %c0_37 = arith.constant 0 : index
    %c0_38 = arith.constant 0 : index
    %c0_39 = arith.constant 0 : index
    %99 = vector.load %arg9[%c0_37, %c0_38, %c0_39] : memref<1x1x32xf32, #tpu.memory_space<vmem>>, vector<1x1x32xf32>
    %100 = vector.shape_cast %99 : vector<1x1x32xf32> to vector<1x32xf32>
    %c0_40 = arith.constant 0 : index
    %c0_41 = arith.constant 0 : index
    %c0_42 = arith.constant 0 : index
    %101 = vector.load %arg10[%c0_40, %c0_41, %c0_42] : memref<1x1x32xf32, #tpu.memory_space<vmem>>, vector<1x1x32xf32>
    %102 = vector.shape_cast %101 : vector<1x1x32xf32> to vector<1x32xf32>
    %cst_43 = arith.constant dense<0.000000e+00> : vector<16xf32>
    %103 = vector.multi_reduction <add>, %98, %cst_43 [1] : vector<16x32xf32> to vector<16xf32>
    %104 = vector.shape_cast %103 : vector<16xf32> to vector<16x1xf32>
    %cst_44 = arith.constant 3.200000e+01 : f32
    %105 = vector.broadcast %cst_44 : f32 to vector<16x1xf32>
    %106 = arith.divf %104, %105 : vector<16x1xf32>
    %107 = vector.broadcast %106 : vector<16x1xf32> to vector<16x32xf32>
    %108 = arith.subf %98, %107 : vector<16x32xf32>
    %109 = arith.mulf %108, %108 : vector<16x32xf32>
    %cst_45 = arith.constant dense<0.000000e+00> : vector<16xf32>
    %110 = vector.multi_reduction <add>, %109, %cst_45 [1] : vector<16x32xf32> to vector<16xf32>
    %111 = vector.shape_cast %110 : vector<16xf32> to vector<16x1xf32>
    %cst_46 = arith.constant 3.200000e+01 : f32
    %112 = vector.broadcast %cst_46 : f32 to vector<16x1xf32>
    %113 = arith.divf %111, %112 : vector<16x1xf32>
    %114 = vector.broadcast %106 : vector<16x1xf32> to vector<16x32xf32>
    %115 = arith.subf %98, %114 : vector<16x32xf32>
    %cst_47 = arith.constant 9.99999974E-6 : f32
    %116 = vector.broadcast %cst_47 : f32 to vector<16x1xf32>
    %117 = arith.addf %113, %116 : vector<16x1xf32>
    %118 = math.rsqrt %117 : vector<16x1xf32>
    %119 = vector.broadcast %118 : vector<16x1xf32> to vector<16x32xf32>
    %120 = arith.mulf %115, %119 : vector<16x32xf32>
    %121 = vector.broadcast %100 : vector<1x32xf32> to vector<16x32xf32>
    %122 = arith.mulf %120, %121 : vector<16x32xf32>
    %123 = vector.broadcast %102 : vector<1x32xf32> to vector<16x32xf32>
    %124 = arith.addf %122, %123 : vector<16x32xf32>
    %c0_48 = arith.constant 0 : index
    %c0_49 = arith.constant 0 : index
    %c0_50 = arith.constant 0 : index
    %125 = vector.load %arg11[%c0_48, %c0_49, %c0_50] : memref<1x32x64xf32, #tpu.memory_space<vmem>>, vector<1x32x64xf32>
    %126 = vector.shape_cast %125 : vector<1x32x64xf32> to vector<32x64xf32>
    %cst_51 = arith.constant dense<0.000000e+00> : vector<16x64xf32>
    %127 = tpu.matmul %124, %126, %cst_51 {dimension_numbers = #tpu.dot_dimension_numbers<[1], [0], [0], [1], [0, 0, 1, 1], [], []>} : vector<16x32xf32>, vector<32x64xf32>, vector<16x64xf32> -> vector<16x64xf32>
    %c0_52 = arith.constant 0 : index
    %c0_53 = arith.constant 0 : index
    %c0_54 = arith.constant 0 : index
    %128 = vector.load %arg12[%c0_52, %c0_53, %c0_54] : memref<1x1x64xf32, #tpu.memory_space<vmem>>, vector<1x1x64xf32>
    %129 = vector.shape_cast %128 : vector<1x1x64xf32> to vector<1x64xf32>
    %130 = vector.broadcast %129 : vector<1x64xf32> to vector<16x64xf32>
    %131 = arith.addf %127, %130 : vector<16x64xf32>
    %cst_55 = arith.constant 5.000000e-01 : f32
    %132 = vector.broadcast %cst_55 : f32 to vector<16x64xf32>
    %133 = arith.mulf %132, %131 : vector<16x64xf32>
    %cst_56 = arith.constant 4.471500e-02 : f32
    %134 = vector.broadcast %cst_56 : f32 to vector<16x64xf32>
    %135 = arith.mulf %134, %131 : vector<16x64xf32>
    %136 = arith.mulf %135, %131 : vector<16x64xf32>
    %137 = arith.mulf %136, %131 : vector<16x64xf32>
    %138 = arith.addf %131, %137 : vector<16x64xf32>
    %cst_57 = arith.constant 0.797884583 : f32
    %139 = vector.broadcast %cst_57 : f32 to vector<16x64xf32>
    %140 = arith.mulf %139, %138 : vector<16x64xf32>
    %141 = math.tanh %140 : vector<16x64xf32>
    %cst_58 = arith.constant 1.000000e+00 : f32
    %142 = vector.broadcast %cst_58 : f32 to vector<16x64xf32>
    %143 = arith.addf %142, %141 : vector<16x64xf32>
    %144 = arith.mulf %133, %143 : vector<16x64xf32>
    %c0_59 = arith.constant 0 : index
    %c0_60 = arith.constant 0 : index
    %c0_61 = arith.constant 0 : index
    %145 = vector.load %arg13[%c0_59, %c0_60, %c0_61] : memref<1x64x32xf32, #tpu.memory_space<vmem>>, vector<1x64x32xf32>
    %146 = vector.shape_cast %145 : vector<1x64x32xf32> to vector<64x32xf32>
    %cst_62 = arith.constant dense<0.000000e+00> : vector<16x32xf32>
    %147 = tpu.matmul %144, %146, %cst_62 {dimension_numbers = #tpu.dot_dimension_numbers<[1], [0], [0], [1], [0, 0, 1, 1], [], []>} : vector<16x64xf32>, vector<64x32xf32>, vector<16x32xf32> -> vector<16x32xf32>
    %c0_63 = arith.constant 0 : index
    %c0_64 = arith.constant 0 : index
    %c0_65 = arith.constant 0 : index
    %148 = vector.load %arg14[%c0_63, %c0_64, %c0_65] : memref<1x1x32xf32, #tpu.memory_space<vmem>>, vector<1x1x32xf32>
    %149 = vector.shape_cast %148 : vector<1x1x32xf32> to vector<1x32xf32>
    %150 = vector.broadcast %149 : vector<1x32xf32> to vector<16x32xf32>
    %151 = arith.addf %147, %150 : vector<16x32xf32>
    %152 = arith.addf %151, %124 : vector<16x32xf32>
    %c0_66 = arith.constant 0 : index
    %c0_67 = arith.constant 0 : index
    %c0_68 = arith.constant 0 : index
    %153 = vector.load %arg15[%c0_66, %c0_67, %c0_68] : memref<1x1x32xf32, #tpu.memory_space<vmem>>, vector<1x1x32xf32>
    %154 = vector.shape_cast %153 : vector<1x1x32xf32> to vector<1x32xf32>
    %c0_69 = arith.constant 0 : index
    %c0_70 = arith.constant 0 : index
    %c0_71 = arith.constant 0 : index
    %155 = vector.load %arg16[%c0_69, %c0_70, %c0_71] : memref<1x1x32xf32, #tpu.memory_space<vmem>>, vector<1x1x32xf32>
    %156 = vector.shape_cast %155 : vector<1x1x32xf32> to vector<1x32xf32>
    %cst_72 = arith.constant dense<0.000000e+00> : vector<16xf32>
    %157 = vector.multi_reduction <add>, %152, %cst_72 [1] : vector<16x32xf32> to vector<16xf32>
    %158 = vector.shape_cast %157 : vector<16xf32> to vector<16x1xf32>
    %cst_73 = arith.constant 3.200000e+01 : f32
    %159 = vector.broadcast %cst_73 : f32 to vector<16x1xf32>
    %160 = arith.divf %158, %159 : vector<16x1xf32>
    %161 = vector.broadcast %160 : vector<16x1xf32> to vector<16x32xf32>
    %162 = arith.subf %152, %161 : vector<16x32xf32>
    %163 = arith.mulf %162, %162 : vector<16x32xf32>
    %cst_74 = arith.constant dense<0.000000e+00> : vector<16xf32>
    %164 = vector.multi_reduction <add>, %163, %cst_74 [1] : vector<16x32xf32> to vector<16xf32>
    %165 = vector.shape_cast %164 : vector<16xf32> to vector<16x1xf32>
    %cst_75 = arith.constant 3.200000e+01 : f32
    %166 = vector.broadcast %cst_75 : f32 to vector<16x1xf32>
    %167 = arith.divf %165, %166 : vector<16x1xf32>
    %168 = vector.broadcast %160 : vector<16x1xf32> to vector<16x32xf32>
    %169 = arith.subf %152, %168 : vector<16x32xf32>
    %cst_76 = arith.constant 9.99999974E-6 : f32
    %170 = vector.broadcast %cst_76 : f32 to vector<16x1xf32>
    %171 = arith.addf %167, %170 : vector<16x1xf32>
    %172 = math.rsqrt %171 : vector<16x1xf32>
    %173 = vector.broadcast %172 : vector<16x1xf32> to vector<16x32xf32>
    %174 = arith.mulf %169, %173 : vector<16x32xf32>
    %175 = vector.broadcast %154 : vector<1x32xf32> to vector<16x32xf32>
    %176 = arith.mulf %174, %175 : vector<16x32xf32>
    %177 = vector.broadcast %156 : vector<1x32xf32> to vector<16x32xf32>
    %178 = arith.addf %176, %177 : vector<16x32xf32>
    %c0_77 = arith.constant 0 : index
    %c0_78 = arith.constant 0 : index
    %179 = vector.load %arg22[%c0_77, %c0_78] : memref<16x32xf32, #tpu.memory_space<vmem>>, vector<16x32xf32>
    tpu.vector_store %arg22[%c0_77, %c0_78], %178 {strides = array<i32>} : memref<16x32xf32, #tpu.memory_space<vmem>>, vector<16x32xf32>,
    %c1_i32 = arith.constant 1 : i32
    %180 = arith.cmpi eq, %arg0, %c1_i32 : i32
    %181 = arith.extui %180 : i1 to i32
    %c0_i32_79 = arith.constant 0 : i32
    %182 = arith.cmpi ne, %181, %c0_i32_79 : i32
    scf.if %182 {
      %183 = vector.extract_strided_slice %178 {offsets = [0, 0], sizes = [1, 32], strides = [1, 1]} : vector<16x32xf32> to vector<1x32xf32>
      %184 = vector.extract_strided_slice %178 {offsets = [8, 0], sizes = [1, 32], strides = [1, 1]} : vector<16x32xf32> to vector<1x32xf32>
      %185 = tpu.concatenate %183, %184 in 0 : vector<1x32xf32>, vector<1x32xf32> -> vector<2x32xf32>
      %c0_80 = arith.constant 0 : index
      %c0_81 = arith.constant 0 : index
      %186 = vector.load %arg17[%c0_80, %c0_81] : memref<32x32xf32, #tpu.memory_space<vmem>>, vector<32x32xf32>
      %cst_82 = arith.constant dense<0.000000e+00> : vector<2x32xf32>
      %187 = tpu.matmul %185, %186, %cst_82 {dimension_numbers = #tpu.dot_dimension_numbers<[1], [0], [0], [1], [0, 0, 1, 1], [], []>} : vector<2x32xf32>, vector<32x32xf32>, vector<2x32xf32> -> vector<2x32xf32>
      %c0_83 = arith.constant 0 : index
      %c0_84 = arith.constant 0 : index
      %188 = vector.load %arg18[%c0_83, %c0_84] : memref<1x32xf32, #tpu.memory_space<vmem>>, vector<1x32xf32>
      %189 = vector.broadcast %188 : vector<1x32xf32> to vector<2x32xf32>
      %190 = arith.addf %187, %189 : vector<2x32xf32>
      %191 = math.tanh %190 : vector<2x32xf32>
      %c0_85 = arith.constant 0 : index
      %c0_86 = arith.constant 0 : index
      %192 = vector.load %arg19[%c0_85, %c0_86] : memref<32x3xf32, #tpu.memory_space<vmem>>, vector<32x3xf32>
      %cst_87 = arith.constant dense<0.000000e+00> : vector<2x3xf32>
      %193 = tpu.matmul %191, %192, %cst_87 {dimension_numbers = #tpu.dot_dimension_numbers<[1], [0], [0], [1], [0, 0, 1, 1], [], []>} : vector<2x32xf32>, vector<32x3xf32>, vector<2x3xf32> -> vector<2x3xf32>
      %c0_88 = arith.constant 0 : index
      %c0_89 = arith.constant 0 : index
      %194 = vector.load %arg20[%c0_88, %c0_89] : memref<1x3xf32, #tpu.memory_space<vmem>>, vector<1x3xf32>
      %195 = vector.broadcast %194 : vector<1x3xf32> to vector<2x3xf32>
      %196 = arith.addf %193, %195 : vector<2x3xf32>
      %cst_90 = arith.constant dense<0xFF800000> : vector<2xf32>
      %197 = vector.multi_reduction <maximumf>, %196, %cst_90 [1] : vector<2x3xf32> to vector<2xf32>
      %198 = vector.shape_cast %197 : vector<2xf32> to vector<2x1xf32>
      %199 = vector.broadcast %198 : vector<2x1xf32> to vector<2x3xf32>
      %200 = arith.subf %196, %199 : vector<2x3xf32>
      %201 = math.exp %200 : vector<2x3xf32>
      %cst_91 = arith.constant dense<0.000000e+00> : vector<2xf32>
      %202 = vector.multi_reduction <add>, %201, %cst_91 [1] : vector<2x3xf32> to vector<2xf32>
      %203 = vector.shape_cast %202 : vector<2xf32> to vector<2x1xf32>
      %204 = tpu.reciprocal %203 : vector<2x1xf32> -> vector<2x1xf32>
      %205 = vector.broadcast %204 : vector<2x1xf32> to vector<2x3xf32>
      %206 = arith.mulf %201, %205 : vector<2x3xf32>
      %c0_92 = arith.constant 0 : index
      %c0_93 = arith.constant 0 : index
      %207 = vector.load %arg21[%c0_92, %c0_93] : memref<2x3xf32, #tpu.memory_space<vmem>>, vector<2x3xf32>
      tpu.vector_store %arg21[%c0_92, %c0_93], %206 {strides = array<i32>} : memref<2x3xf32, #tpu.memory_space<vmem>>, vector<2x3xf32>,
    } else {
    }
    return
  }
  func.func @transform_0(%arg0: i32) -> (i32, i32) {
    %c0_i32 = arith.constant 0 : i32
    %c0_i32_0 = arith.constant 0 : i32
    %c0_i32_1 = arith.constant 0 : i32
    return %c0_i32, %c0_i32_0 : i32, i32
  }
  func.func @transform_1(%arg0: i32) -> (i32, i32) {
    %c0_i32 = arith.constant 0 : i32
    %c0_i32_0 = arith.constant 0 : i32
    %c0_i32_1 = arith.constant 0 : i32
    return %c0_i32, %c0_i32_0 : i32, i32
  }
  func.func @transform_2(%arg0: i32) -> (i32, i32) {
    %c0_i32 = arith.constant 0 : i32
    %c0_i32_0 = arith.constant 0 : i32
    %c0_i32_1 = arith.constant 0 : i32
    return %c0_i32, %c0_i32_0 : i32, i32
  }
  func.func @transform_3(%arg0: i32) -> (i32, i32) {
    %c0_i32 = arith.constant 0 : i32
    %c0_i32_0 = arith.constant 0 : i32
    %c0_i32_1 = arith.constant 0 : i32
    return %c0_i32, %c0_i32_0 : i32, i32
  }
  func.func @transform_4(%arg0: i32) -> (i32, i32, i32) {
    %c0_i32 = arith.constant 0 : i32
    %c0_i32_0 = arith.constant 0 : i32
    %c0_i32_1 = arith.constant 0 : i32
    return %arg0, %c0_i32, %c0_i32_0 : i32, i32, i32
  }
  func.func @transform_5(%arg0: i32) -> (i32, i32, i32) {
    %c0_i32 = arith.constant 0 : i32
    %c0_i32_0 = arith.constant 0 : i32
    %c0_i32_1 = arith.constant 0 : i32
    return %arg0, %c0_i32, %c0_i32_0 : i32, i32, i32
  }
  func.func @transform_6(%arg0: i32) -> (i32, i32, i32) {
    %c0_i32 = arith.constant 0 : i32
    %c0_i32_0 = arith.constant 0 : i32
    %c0_i32_1 = arith.constant 0 : i32
    return %arg0, %c0_i32, %c0_i32_0 : i32, i32, i32
  }
  func.func @transform_7(%arg0: i32) -> (i32, i32, i32) {
    %c0_i32 = arith.constant 0 : i32
    %c0_i32_0 = arith.constant 0 : i32
    %c0_i32_1 = arith.constant 0 : i32
    return %arg0, %c0_i32, %c0_i32_0 : i32, i32, i32
  }
  func.func @transform_8(%arg0: i32) -> (i32, i32, i32) {
    %c0_i32 = arith.constant 0 : i32
    %c0_i32_0 = arith.constant 0 : i32
    %c0_i32_1 = arith.constant 0 : i32
    return %arg0, %c0_i32, %c0_i32_0 : i32, i32, i32
  }
  func.func @transform_9(%arg0: i32) -> (i32, i32, i32) {
    %c0_i32 = arith.constant 0 : i32
    %c0_i32_0 = arith.constant 0 : i32
    %c0_i32_1 = arith.constant 0 : i32
    return %arg0, %c0_i32, %c0_i32_0 : i32, i32, i32
  }
  func.func @transform_10(%arg0: i32) -> (i32, i32, i32) {
    %c0_i32 = arith.constant 0 : i32
    %c0_i32_0 = arith.constant 0 : i32
    %c0_i32_1 = arith.constant 0 : i32
    return %arg0, %c0_i32, %c0_i32_0 : i32, i32, i32
  }
  func.func @transform_11(%arg0: i32) -> (i32, i32, i32) {
    %c0_i32 = arith.constant 0 : i32
    %c0_i32_0 = arith.constant 0 : i32
    %c0_i32_1 = arith.constant 0 : i32
    return %arg0, %c0_i32, %c0_i32_0 : i32, i32, i32
  }
  func.func @transform_12(%arg0: i32) -> (i32, i32, i32) {
    %c0_i32 = arith.constant 0 : i32
    %c0_i32_0 = arith.constant 0 : i32
    %c0_i32_1 = arith.constant 0 : i32
    return %arg0, %c0_i32, %c0_i32_0 : i32, i32, i32
  }
  func.func @transform_13(%arg0: i32) -> (i32, i32, i32) {
    %c0_i32 = arith.constant 0 : i32
    %c0_i32_0 = arith.constant 0 : i32
    %c0_i32_1 = arith.constant 0 : i32
    return %arg0, %c0_i32, %c0_i32_0 : i32, i32, i32
  }
  func.func @transform_14(%arg0: i32) -> (i32, i32, i32) {
    %c0_i32 = arith.constant 0 : i32
    %c0_i32_0 = arith.constant 0 : i32
    %c0_i32_1 = arith.constant 0 : i32
    return %arg0, %c0_i32, %c0_i32_0 : i32, i32, i32
  }
  func.func @transform_15(%arg0: i32) -> (i32, i32, i32) {
    %c0_i32 = arith.constant 0 : i32
    %c0_i32_0 = arith.constant 0 : i32
    %c0_i32_1 = arith.constant 0 : i32
    return %arg0, %c0_i32, %c0_i32_0 : i32, i32, i32
  }
  func.func @transform_16(%arg0: i32) -> (i32, i32) {
    %c0_i32 = arith.constant 0 : i32
    %c0_i32_0 = arith.constant 0 : i32
    %c0_i32_1 = arith.constant 0 : i32
    return %c0_i32, %c0_i32_0 : i32, i32
  }
  func.func @transform_17(%arg0: i32) -> (i32, i32) {
    %c0_i32 = arith.constant 0 : i32
    %c0_i32_0 = arith.constant 0 : i32
    %c0_i32_1 = arith.constant 0 : i32
    return %c0_i32, %c0_i32_0 : i32, i32
  }
  func.func @transform_18(%arg0: i32) -> (i32, i32) {
    %c0_i32 = arith.constant 0 : i32
    %c0_i32_0 = arith.constant 0 : i32
    %c0_i32_1 = arith.constant 0 : i32
    return %c0_i32, %c0_i32_0 : i32, i32
  }
  func.func @transform_19(%arg0: i32) -> (i32, i32) {
    %c0_i32 = arith.constant 0 : i32
    %c0_i32_0 = arith.constant 0 : i32
    %c0_i32_1 = arith.constant 0 : i32
    return %c0_i32, %c0_i32_0 : i32, i32
  }
  func.func @transform_20(%arg0: i32) -> (i32, i32) {
    %c0_i32 = arith.constant 0 : i32
    %c0_i32_0 = arith.constant 0 : i32
    %c0_i32_1 = arith.constant 0 : i32
    return %c0_i32, %c0_i32_0 : i32, i32
  }
}

</mosaic_0001>

<bundles_post_ra>
// kernel: forward.1
= control target key start
LH: loop header
LB: loop body
LE: loop exit
PB: predicated region body
PF: predicated region fallthrough
CT: control target
= control target key end

     0   :  { %s3587_s0 = inlined_call_operand.vmem [shape: f32[16,32], index: 0, kind: input, shape index: {}]   ;;  %s3588_s1 = inlined_call_operand.vmem [shape: f32[16,16], index: 1, kind: input, shape index: {}]   ;;  %s3589_s2 = inlined_call_operand.vmem [shape: f32[1,32], index: 2, kind: input, shape index: {}]   ;;  %s3590_s3 = inlined_call_operand.vmem [shape: f32[1,32], index: 3, kind: input, shape index: {}]   ;;  %s3591_s4 = inlined_call_operand.vmem [shape: f32[2,32,96], index: 4, kind: input, shape index: {}]   ;;  %s3592_s5 = inlined_call_operand.vmem [shape: f32[2,1,96], index: 5, kind: input, shape index: {}]   ;;  %s3593_s6 = inlined_call_operand.vmem [shape: f32[2,32,32], index: 6, kind: input, shape index: {}]   ;;  %s3594_s7 = inlined_call_operand.vmem [shape: f32[2,1,32], index: 7, kind: input, shape index: {}]   ;;  %s3595_s8 = inlined_call_operand.vmem [shape: f32[2,1,32], index: 8, kind: input, shape index: {}]   ;;  %s3596_s9 = inlined_call_operand.vmem [shape: f32[2,1,32], index: 9, kind: input, shape index: {}]   ;;  %s3597_s10 = inlined_call_operand.vmem [shape: f32[2,32,64], index: 10, kind: input, shape index: {}]   ;;  %s3598_s11 = inlined_call_operand.vmem [shape: f32[2,1,64], index: 11, kind: input, shape index: {}]   ;;  %s3599_s12 = inlined_call_operand.vmem [shape: f32[2,64,32], index: 12, kind: input, shape index: {}]   ;;  %s3600_s13 = inlined_call_operand.vmem [shape: f32[2,1,32], index: 13, kind: input, shape index: {}]   ;;  %s3601_s14 = inlined_call_operand.vmem [shape: f32[2,1,32], index: 14, kind: input, shape index: {}]   ;;  %s3602_s15 = inlined_call_operand.vmem [shape: f32[2,1,32], index: 15, kind: input, shape index: {}]   ;;  %s3603_s16 = inlined_call_operand.vmem [shape: f32[32,32], index: 16, kind: input, shape index: {}]   ;;  %s3604_s17 = inlined_call_operand.vmem [shape: f32[1,32], index: 17, kind: input, shape index: {}]   ;;  %s3605_s18 = inlined_call_operand.vmem [shape: f32[32,3], index: 18, kind: input, shape index: {}]   ;;  %s3606_s19 = inlined_call_operand.vmem [shape: f32[1,3], index: 19, kind: input, shape index: {}]   ;;  %s3607_s20 = inlined_call_operand.hbm [shape: f32[2,3], index: 20, kind: output, shape index: {}]  }
   0x1   :  { %3613 = sst [smem:[#allocation7_spill]] %s3587_s0 }
   0x2   :  { %3614 = sst [smem:[#allocation8_spill]] %s3588_s1 }
   0x3   :  { %3615 = sst [smem:[#allocation9_spill]] %s3589_s2 }
   0x4   :  { %3616 = sst [smem:[#allocation10_spill]] %s3590_s3 }
   0x5   :  { %3617 = sst [smem:[#allocation11_spill]] %s3591_s4 }
   0x6   :  { %3618 = sst [smem:[#allocation12_spill]] %s3593_s6 }
   0x7   :  { %3619 = sst [smem:[#allocation13_spill]] %s3603_s16 }
   0x8   :  { %3620 = sst [smem:[#allocation14_spill]] %s3604_s17 }
   0x9   :  { %3621 = sst [smem:[#allocation15_spill]] %s3605_s18 }
   0xa   :  { %3622 = sst [smem:[#allocation16_spill]] %s3606_s19 }
   0xb   :  { %3623 = sst [smem:[#allocation17_spill]] %s3607_s20 }
   0xc   :  { %25 = vsyncpa [#allocation4], 0  ;;  %s3253_s1 = smov 0  }
   0xd LB: > { %3624 = sst [smem:[#allocation6_spill]] %s3132_s1  ;;  %s3259_s22 = sadd.s32 4294967295, %s3132_s1   ;;  %s3132_s1 = sphi %s3253_s1, %s31_s1  }
   0xe   : > { %p2730_p0 = scmp.ge.s32.totalorder %s3132_s1, 1  ;;  %p652_p1 = scmp.lt.s32.totalorder %s3132_s1, 3 }
  0x10   : > { %p653_p2 = pnand %p2730_p0, %p652_p1 }
  0x11   : > { %p744_p3 = scmp.lt.s32.totalorder (!%p653_p2), %s3259_s22, 1  ;;  %s3625_s28 = sld [smem:[#allocation11_spill]] (!%p653_p2) }
  0x12   : > { %656 = sbr.rel (%p653_p2) target bundleno = 4354 (0x1102), region = 100  ;;  %s3626_s6 = sld [smem:[#allocation12_spill]] (!%p653_p2) }
  0x13   : > { %p2739_p4 = scmp.ne.s32.totalorder (!%p653_p2), %s3259_s22, 0 }
  0x17   : > { %s3265_s23 = scalar_select %p744_p3, %s3259_s22, 1 }
  0x18   : > { %s3627_s1 = sld [smem:[#allocation7_spill]] (!%p2739_p4) }
  0x19   : > { %s2797_s24 = sshll.u32 %s3265_s23, 5  ;;  %s2800_s16 = sshll.u32 %s3265_s23, 6 }
  0x1a   : > { %s3275_s4 = scalar_lea.vmem %s3625_s28, %s2797_s24  ;;  %s3280_s0 = scalar_lea.vmem %s3626_s6, %s2797_s24 }
  0x1b   : > { %s3297_s28 = scalar_lea.vmem %s3597_s10, %s2797_s24  ;;  %s3307_s20 = scalar_lea.vmem %s3599_s12, %s2800_s16 }
  0x1c   : > { %s781_s2 = scalar_lea.vmem %s3600_s13, %s3265_s23  ;;  %s784_s26 = scalar_lea.vmem %s3601_s14, %s3265_s23 }
  0x1d   : > { %s787_s18 = scalar_lea.vmem %s3602_s15, %s3265_s23  ;;  %791 = sbr.rel (%p2739_p4) target bundleno = 348 (0x15c), region = 104 }
  0x1e   : > { %s3628_s21 = smov (!%p2739_p4), %s3627_s1  ;;  %s3629_s17 = sld [smem:[#allocation9_spill]] (!%p2739_p4) }
  0x1f   : > { %s3630_s24 = sld [smem:[#allocation10_spill]] (!%p2739_p4) }
  0x22   : > { %v792_v0 = vld [vmem:[%s3627_s1] sm:$0xff]  ;;  %vm796_vm0 = vcmask 261120   ;;  %v793_v1 = vld [vmem:[%s3628_s21 + $0x8] sm:$0xff] }
  0x23   : > { %v797_v2 = vsel %vm796_vm0, %v792_v0, 0.0  ;;  %v800_v3 = vsel %vm796_vm0, %v793_v1, 0.0 }
  0x24   : > { %798 = vadd.xlane.f32.xlu0 %v797_v2  ;;  %v2740_v21 = vld [vmem:[%s3629_s17] ss:$0 sm:$0xff] }
  0x25   : > { %v2741_v23 = vld [vmem:[%s3630_s24] ss:$0 sm:$0xff] }
  0x28   : > { %801 = vadd.xlane.f32.xlu0 %v800_v3 }
  0xad   : > { %v799_v4 = vpop.xlane.xlu0 %798 }
  0xae   : > { %v804_v5 = vmul.f32 0.03125, %v799_v4 }
  0xb0   : > { %v806_v6 = vsub.f32 %v792_v0, %v804_v5 }
  0xb1   : > { %v802_v7 = vpop.xlane.xlu0 %801 }
  0xb2   : > { %v805_v8 = vmul.f32 0.03125, %v802_v7  ;;  %v808_v9 = vmul.f32 %v806_v6, %v806_v6 }
  0xb4   : > { %v807_v10 = vsub.f32 %v793_v1, %v805_v8  ;;  %v810_v11 = vsel %vm796_vm0, %v808_v9, 0.0 }
  0xb5   : > { %811 = vadd.xlane.f32.xlu1 %v810_v11 }
  0xb6   : > { %v809_v12 = vmul.f32 %v807_v10, %v807_v10 }
  0xb8   : > { %v813_v13 = vsel %vm796_vm0, %v809_v12, 0.0 }
  0xb9   : > { %814 = vadd.xlane.f32.xlu1 %v813_v13 }
 0x13e   : > { %v812_v14 = vpop.xlane.xlu1 %811 }
 0x13f   : > { %v816_v15 = vmul.f32 0.03125, %v812_v14 }
 0x141   : > { %v818_v16 = vadd.f32 1e-05, %v816_v15 }
 0x142   : > { %v815_v17 = vpop.xlane.xlu1 %814 }
 0x143   : > { %3044 = vrsqrt.f32 %v818_v16  ;;  %v817_v18 = vmul.f32 0.03125, %v815_v17 }
 0x145   : > { %v819_v19 = vadd.f32 1e-05, %v817_v18 }
 0x147   : > { %3046 = vrsqrt.f32 %v819_v19 }
 0x150   : > { %v3045_v20 = vpop.eup %3044 }
 0x151   : > { %v822_v22 = vmul.f32 %v3045_v20, %v806_v6 }
 0x153   : > { %v830_v24 = vmul.f32 %v2740_v21, %v822_v22 }
 0x154   : > { %v3047_v25 = vpop.eup %3046 }
 0x155   : > { %v838_v26 = vadd.f32 %v2741_v23, %v830_v24  ;;  %v823_v27 = vmul.f32 %v3047_v25, %v807_v10 }
 0x157   : > { %840 = vst.msk [vmem:[#allocation2] sm:$0xff] %vm796_vm0, %v838_v26  ;;  %v831_v28 = vmul.f32 %v2740_v21, %v823_v27 }
 0x159   : > { %v839_v29 = vadd.f32 %v2741_v23, %v831_v28 }
 0x15b   : > { %841 = vst.msk [vmem:[#allocation2 + $0x8] sm:$0xff] %vm796_vm0, %v839_v29 }
 0x15c PF: > { %v849_v30 = vld [vmem:[%s3275_s4 + $0x18] sm:$0xff]  ;;  %v848_v31 = vld [vmem:[%s3275_s4 + $0x10] sm:$0xff]  ;;  %vm857_vm1 = vcmask 261120   ;;  %v847_v33 = vld [vmem:[%s3275_s4 + $0x8] sm:$0xff]  ;;  %s3631_s30 = scalar_lea.vmem %s3592_s5, %s3265_s23  ;;  %vm949_vm2 = vcmask 64512   ;;  %s3135_s1 = smov 96  }
 0x15d   : > { %2877 = vmatprep.subr.mxu0 %v849_v30  ;;  %v846_v34 = vld [vmem:[%s3275_s4] sm:$0xff]  ;;  %s3134_s4 = smov 88   ;;  %s3136_s16 = smov 120   ;;  %vm1033_vm3 = vcmask 130048   ;;  %vm2252_vm4 = vcmask 523264  }
 0x15e   : > { %v3342_v32 = vld [vmem:[#allocation2] sm:$0xff]  ;;  %2878 = vmatpush3.msra.mxu0 %v849_v30  ;;  %s3632_s17 = sld [smem:[#allocation8_spill]]  ;;  %s3137_s24 = smov 64  }
 0x15f   : > { %2885 = vmatprep.mubr.msk.f32.mxu0 %vm857_vm1, %v3342_v32  ;;  %2879 = vmatprep.subr.mxu0 %v848_v31  ;;  %v2742_v36 = vld [vmem:[%s3631_s30] ss:$0 sm:$0xff]  ;;  %s3138_s27 = smov 56   ;;  %s3139_s29 = smov 80  }
 0x160   : > { %2880 = vmatpush3.msra.mxu0 %v848_v31  ;;  %s3140_s30 = smov 112   ;;  %s3144_s6 = smov 40  }
 0x161   : > { %2881 = vmatprep.subr.mxu0 %v847_v33  ;;  %s3633_s25 = scalar_lea.vmem %s3594_s7, %s3265_s23  ;;  %p2788_p5 = scmp.ne.s32.totalorder %s3259_s22, 1 }
 0x162   : > { %2882 = vmatpush3.msra.mxu0 %v847_v33  ;;  %v3348_v35 = vld [vmem:[#allocation2 + $0x8] sm:$0xff] }
 0x163   : > { %2883 = vmatprep.subr.mxu0 %v846_v34 }
 0x164   : > { %2884 = vmatpush3.msra.mxu0 %v846_v34  ;;  %v3384_v47 = vld [vmem:[%s3632_s17 + $0x8] sm:$0xff]  ;;  %v3389_v49 = vld [vmem:[%s3632_s17] sm:$0xff] }
 0x165   : > { %2886 = vmatmul.mubr.msk.f32.vlgmr.msra.gmra.mxu0 %vm857_vm1, %v3348_v35  ;;  %v940_v34 = vld [vmem:[%s3280_s0 + $0x8] sm:$0xff] }
 0x225   : > { %v2887_v37 = vpop.f32.mrf.mxu0 }
 0x226   : > { %v3357_v38 = vadd.f32 %v2887_v37, %v2742_v36 }
 0x227   : > { %v930_v39 = vpop.f32.mrf.mxu0 }
 0x228   : > { %v3359_v40 = vadd.f32 %v2742_v36, %v930_v39  ;;  %1149 = vrot.lane.b32.xlu1 %v3357_v38, %s3134_s4  ;;  %947 = vrot.lane.b32.xlu0 %v3357_v38, %s3135_s1  ;;  %v939_v36 = vld [vmem:[%s3280_s0] sm:$0xff] }
 0x22a   : > { %2892 = vmatprep.mubr.msk.f32.mxu1 %vm949_vm2, %v3359_v40 }
 0x22c   : > { %1147 = vrot.lane.b32.xlu1 %v3359_v40, %s3134_s4  ;;  %945 = vrot.lane.b32.xlu0 %v3359_v40, %s3135_s1  ;;  %s3141_s4 = smov 72   ;;  %s3142_s1 = smov 104  }
 0x230   : > { %1145 = vrot.lane.b32.xlu1 %v3357_v38, %s3136_s16  ;;  %1143 = vrot.lane.b32.xlu0 %v3359_v40, %s3136_s16  ;;  %s3143_s16 = smov 48  }
 0x29a   : > { %v948_v41 = vpop.permute.xlu0 %947  ;;  %v1150_v42 = vpop.permute.xlu1 %1149 }
 0x29b   : > { %2888 = vmatprep.subr.msk.mxu1 %vm949_vm2, %v948_v41 }
 0x29c   : > { %2889 = vmatpush3.xpose.msk.msra.mxu1 %vm949_vm2, %v948_v41 }
 0x29e   : > { %v946_v43 = vpop.permute.xlu0 %945  ;;  %v1148_v45 = vpop.permute.xlu1 %1147 }
 0x29f   : > { %2890 = vmatprep.subr.msk.mxu1 %vm949_vm2, %v946_v43 }
 0x2a0   : > { %2891 = vmatpush3.xpose.msk.msra.mxu1 %vm949_vm2, %v946_v43 }
 0x2a1   : > { %2902 = vmatprep.subr.msk.mxu1 %vm949_vm2, %v1150_v42 }
 0x2a2   : > { %v1144_v44 = vpop.permute.xlu0 %1143  ;;  %v1146_v46 = vpop.permute.xlu1 %1145 }
 0x2a3   : > { %2893 = vmatmul.mubr.msk.f32.vlgmr.msra.gmra.mxu1 %vm949_vm2, %v3357_v38 }
 0x2a4   : > { %2903 = vmatpush3.xpose.msk.msra.mxu1 %vm949_vm2, %v1150_v42  ;;  %2906 = vmatprep.mubr.msk.f32.mxu1 %vm949_vm2, %v1144_v44 }
 0x2a5   : > { %2904 = vmatprep.subr.msk.mxu1 %vm949_vm2, %v1148_v45 }
 0x2a8   : > { %2905 = vmatpush3.xpose.msk.msra.mxu1 %vm949_vm2, %v1148_v45 }
 0x2ab   : > { %2907 = vmatmul.mubr.msk.f32.vlgmr.msra.gmra.mxu1 %vm949_vm2, %v1146_v46 }
 0x363   : > { %v2894_v48 = vpop.f32.mrf.mxu1 }
 0x364   : > { %v1030_v50 = vadd.f32 %v2894_v48, %v3384_v47 }
 0x365   : > { %v1024_v51 = vpop.f32.mrf.mxu1 }
 0x366   : > { %v1025_v52 = vadd.f32 %v1024_v51, %v3389_v49  ;;  %v1037_v53 = vsel %vm1033_vm3, %v1030_v50, -inf }
 0x367   : > { %1038 = vmax.xlane.f32.xlu1 %v1037_v53 }
 0x368   : > { %v1034_v54 = vsel %vm1033_vm3, %v1025_v52, -inf }
 0x369   : > { %1035 = vmax.xlane.f32.xlu0 %v1034_v54 }
 0x36b   : > { %v2908_v55 = vpop.f32.mrf.mxu1 }
 0x36c   : > { %v1231_v58 = vadd.f32 %v2908_v55, %v3384_v47 }
 0x36d   : > { %v1225_v56 = vpop.f32.mrf.mxu1 }
 0x36e   : > { %v1226_v57 = vadd.f32 %v1225_v56, %v3389_v49  ;;  %v1237_v60 = vsel %vm1033_vm3, %v1231_v58, -inf }
 0x370   : > { %v1234_v59 = vsel %vm1033_vm3, %v1226_v57, -inf }
 0x371   : > { %1235 = vmax.xlane.f32.xlu0 %v1234_v59 }
 0x375   : > { %1238 = vmax.xlane.f32.xlu0 %v1237_v60 }
 0x378   : > { %1058 = vrot.lane.b32.xlu1 %v3357_v38, %s3137_s24 }
 0x3f0   : > { %v1039_v61 = vpop.xlane.xlu1 %1038 }
 0x3f1   : > { %v1041_v62 = vsub.f32 %v1030_v50, %v1039_v61 }
 0x3f2   : > { %v1036_v63 = vpop.xlane.xlu0 %1035 }
 0x3f3   : > { %v1044_v0 = vmul.f32 1.442695, %v1041_v62  ;;  %v1040_v1 = vsub.f32 %v1025_v52, %v1036_v63 }
 0x3f4   : > { %v1059_v2 = vpop.permute.xlu1 %1058 }
 0x3f5   : > { %3048 = vpow2.f32 %v1044_v0  ;;  %v1042_v3 = vmul.f32 1.442695, %v1040_v1  ;;  %2895 = vmatprep.subr.mxu0 %v1059_v2 }
 0x3f6   : > { %2896 = vmatpush3.msra.mxu0 %v1059_v2 }
 0x3f7   : > { %3050 = vpow2.f32 %v1042_v3 }
 0x3fa   : > { %v1236_v4 = vpop.xlane.xlu0 %1235 }
 0x3fb   : > { %v1240_v14 = vsub.f32 %v1226_v57, %v1236_v4 }
 0x3fd   : > { %v1242_v15 = vmul.f32 1.442695, %v1240_v14 }
 0x3fe   : > { %v1239_v5 = vpop.xlane.xlu0 %1238 }
 0x3ff   : > { %v1241_v6 = vsub.f32 %v1231_v58, %v1239_v5 }
 0x401   : > { %v1244_v7 = vmul.f32 1.442695, %v1241_v6 }
 0x402   : > { %v3049_v8 = vpop.eup %3048 }
 0x403   : > { %3052 = vpow2.f32 %v1244_v7  ;;  %v1049_v9 = vsel %vm1033_vm3, %v3049_v8, 0.0 }
 0x404   : > { %v3051_v10 = vpop.eup %3050  ;;  %1050 = vadd.xlane.f32.xlu0 %v1049_v9  ;;  %3054 = vpow2.f32 %v1242_v15 }
 0x405   : > { %v1046_v11 = vsel %vm1033_vm3, %v3051_v10, 0.0 }
 0x406   : > { %1047 = vadd.xlane.f32.xlu1 %v1046_v11 }
 0x410   : > { %v3053_v12 = vpop.eup %3052 }
 0x411   : > { %v1249_v13 = vsel %vm1033_vm3, %v3053_v12, 0.0  ;;  %v3055_v16 = vpop.eup %3054 }
 0x412   : > { %1250 = vadd.xlane.f32.xlu0 %v1249_v13  ;;  %v1246_v17 = vsel %vm1033_vm3, %v3055_v16, 0.0 }
 0x417   : > { %1258 = vrot.lane.b32.xlu1 %v3357_v38, %s3138_s27 }
 0x428   : > { %1056 = vrot.lane.b32.xlu0 %v3359_v40, %s3137_s24  ;;  %s3637_s24 = sld [smem:[#allocation13_spill]] (!%p2788_p5) }
 0x42c   : > { %1511 = vrot.lane.b32.xlu0 %v3357_v38, %s3139_s29 }
 0x430   : > { %1505 = vrot.lane.b32.xlu0 %v3359_v40, %s3140_s30 }
 0x434   : > { %1794 = vrot.lane.b32.xlu0 %v3357_v38, %s3141_s4 }
 0x438   : > { %1788 = vrot.lane.b32.xlu0 %v3359_v40, %s3142_s1 }
 0x43b   : > { %1247 = vadd.xlane.f32.xlu1 %v1246_v17 }
 0x44c   : > { %1256 = vrot.lane.b32.xlu1 %v3359_v40, %s3138_s27  ;;  %s3640_s27 = sld [smem:[#allocation16_spill]] (!%p2788_p5) }
 0x450   : > { %1509 = vrot.lane.b32.xlu1 %v3359_v40, %s3139_s29 }
 0x454   : > { %1507 = vrot.lane.b32.xlu1 %v3357_v38, %s3140_s30  ;;  %s3635_s30 = scalar_lea.vmem %s3596_s9, %s3265_s23 }
 0x458   : > { %1792 = vrot.lane.b32.xlu1 %v3359_v40, %s3141_s4 }
 0x45c   : > { %1790 = vrot.lane.b32.xlu1 %v3357_v38, %s3142_s1 }
 0x48d   : > { %v1051_v18 = vpop.xlane.xlu0 %1050 }
 0x48e   : > { %3056 = vrcp.f32 %v1051_v18 }
 0x48f   : > { %v1048_v19 = vpop.xlane.xlu1 %1047 }
 0x490   : > { %3058 = vrcp.f32 %v1048_v19 }
 0x493   : > { %v1259_v26 = vpop.permute.xlu1 %1258 }
 0x49b   : > { %v1251_v20 = vpop.xlane.xlu0 %1250  ;;  %v3057_v21 = vpop.eup %3056 }
 0x49c   : > { %v1055_v25 = vmul.f32 %v3057_v21, %v3049_v8  ;;  %3060 = vrcp.f32 %v1251_v20 }
 0x49d   : > { %v3059_v22 = vpop.eup %3058 }
 0x49e   : > { %v1054_v23 = vmul.f32 %v3059_v22, %v3051_v10 }
 0x49f   : > { %v1057_v24 = vpop.permute.xlu0 %1056 }
 0x4a0   : > { %2897 = vmatprep.subr.mxu0 %v1057_v24  ;;  %2899 = vmatprep.mubr.msk.f32.mxu0 %vm1033_vm3, %v1054_v23 }
 0x4a1   : > { %2898 = vmatpush3.msra.mxu0 %v1057_v24 }
 0x4a2   : > { %2900 = vmatmul.mubr.msk.f32.vlgmr.msra.gmra.mxu0 %vm1033_vm3, %v1055_v25  ;;  %2909 = vmatprep.subr.mxu0 %v1259_v26  ;;  %v941_v25 = vld [vmem:[%s3280_s0 + $0x10] sm:$0xff] }
 0x4a3   : > { %2910 = vmatpush3.msra.mxu0 %v1259_v26  ;;  %v1512_v39 = vpop.permute.xlu0 %1511 }
 0x4a7   : > { %v1506_v44 = vpop.permute.xlu0 %1505 }
 0x4a9   : > { %v3061_v29 = vpop.eup %3060 }
 0x4aa   : > { %v1255_v33 = vmul.f32 %v3061_v29, %v3053_v12 }
 0x4ab   : > { %v1795_v46 = vpop.permute.xlu0 %1794 }
 0x4af   : > { %v1789_v50 = vpop.permute.xlu0 %1788 }
 0x4c4   : > { %v1248_v27 = vpop.xlane.xlu1 %1247 }
 0x4c5   : > { %3062 = vrcp.f32 %v1248_v27 }
 0x4c8   : > { %v1257_v28 = vpop.permute.xlu1 %1256 }
 0x4c9   : > { %2911 = vmatprep.subr.mxu0 %v1257_v28 }
 0x4ca   : > { %2912 = vmatpush3.msra.mxu0 %v1257_v28 }
 0x4cb   : > { %2916 = vmatprep.subr.mxu0 %v940_v34 }
 0x4cc   : > { %v1510_v45 = vpop.permute.xlu1 %1509 }
 0x4d0   : > { %v1508_v48 = vpop.permute.xlu1 %1507 }
 0x4d2   : > { %v3063_v30 = vpop.eup %3062 }
 0x4d3   : > { %v1254_v31 = vmul.f32 %v3063_v30, %v3055_v16 }
 0x4d4   : > { %v1793_v51 = vpop.permute.xlu1 %1792 }
 0x4d5   : > { %2913 = vmatprep.mubr.msk.f32.mxu0 %vm1033_vm3, %v1254_v31 }
 0x4d6   : > { %2914 = vmatmul.mubr.msk.f32.vlgmr.msra.gmra.mxu0 %vm1033_vm3, %v1255_v33 }
 0x4d7   : > { %2917 = vmatpush3.msra.mxu0 %v940_v34 }
 0x4d8   : > { %2921 = vmatprep.subr.mxu0 %v939_v36  ;;  %v1791_v52 = vpop.permute.xlu1 %1790 }
 0x562   : > { %v2901_v37 = vpop.f32.mrf.mxu0 }
 0x564   : > { %v1134_v41 = vpop.f32.mrf.mxu0 }
 0x596   : > { %v2915_v42 = vpop.f32.mrf.mxu0 }
 0x598   : > { %v1334_v43 = vpop.f32.mrf.mxu0 }
 0x599   : > { %2918 = vmatprep.mubr.msk.f32.mxu0 %vm949_vm2, %v1334_v43 }
 0x59a   : > { %2919 = vmatmul.mubr.msk.f32.vlgmr.msra.gmra.mxu0 %vm949_vm2, %v2915_v42 }
 0x59b   : > { %2922 = vmatpush3.msra.mxu0 %v939_v36  ;;  %2923 = vmatprep.mubr.msk.f32.mxu0 %vm949_vm2, %v1134_v41 }
 0x59c   : > { %2926 = vmatprep.subr.msk.mxu0 %vm949_vm2, %v1512_v39 }
 0x59e   : > { %2924 = vmatmul.mubr.msk.f32.vlgmr.msra.gmra.mxu0 %vm949_vm2, %v2901_v37 }
 0x59f   : > { %2927 = vmatpush3.xpose.msk.msra.mxu0 %vm949_vm2, %v1512_v39  ;;  %2930 = vmatprep.mubr.msk.f32.mxu0 %vm949_vm2, %v1506_v44 }
 0x5a0   : > { %2928 = vmatprep.subr.msk.mxu0 %vm949_vm2, %v1510_v45 }
 0x5a3   : > { %2929 = vmatpush3.xpose.msk.msra.mxu0 %vm949_vm2, %v1510_v45 }
 0x5a4   : > { %2945 = vmatprep.subr.msk.mxu0 %vm949_vm2, %v1795_v46 }
 0x5a6   : > { %2931 = vmatmul.mubr.msk.f32.vlgmr.msra.gmra.mxu0 %vm949_vm2, %v1508_v48 }
 0x5a7   : > { %2946 = vmatpush3.xpose.msk.msra.mxu0 %vm949_vm2, %v1795_v46  ;;  %2949 = vmatprep.mubr.msk.f32.mxu0 %vm949_vm2, %v1789_v50  ;;  %v942_v46 = vld [vmem:[%s3280_s0 + $0x18] sm:$0xff] }
 0x5a8   : > { %2947 = vmatprep.subr.msk.mxu0 %vm949_vm2, %v1793_v51 }
 0x5ab   : > { %2948 = vmatpush3.xpose.msk.msra.mxu0 %vm949_vm2, %v1793_v51 }
 0x5ae   : > { %2950 = vmatmul.mubr.msk.f32.vlgmr.msra.gmra.mxu0 %vm949_vm2, %v1791_v52 }
 0x65a   : > { %v2920_v53 = vpop.f32.mrf.mxu0 }
 0x65c   : > { %v1415_v54 = vpop.f32.mrf.mxu0 }
 0x65e   : > { %v2925_v55 = vpop.f32.mrf.mxu0 }
 0x65f   : > { %v3439_v56 = vadd.f32 %v2925_v55, %v2920_v53 }
 0x660   : > { %v1496_v57 = vpop.f32.mrf.mxu0 }
 0x661   : > { %v3441_v58 = vadd.f32 %v1496_v57, %v1415_v54  ;;  %v2777_v57 = vld [vmem:[%s3633_s25] ss:$0 sm:$0xff] }
 0x666   : > { %v2932_v59 = vpop.f32.mrf.mxu0 }
 0x667   : > { %v1593_v60 = vadd.f32 %v2932_v59, %v3384_v47 }
 0x668   : > { %v1587_v61 = vpop.f32.mrf.mxu0 }
 0x669   : > { %v1588_v62 = vadd.f32 %v1587_v61, %v3389_v49  ;;  %v1599_v63 = vsel %vm1033_vm3, %v1593_v60, -inf }
 0x66a   : > { %1600 = vmax.xlane.f32.xlu1 %v1599_v63 }
 0x66b   : > { %v1596_v0 = vsel %vm1033_vm3, %v1588_v62, -inf }
 0x66c   : > { %1597 = vmax.xlane.f32.xlu0 %v1596_v0 }
 0x66e   : > { %v2951_v1 = vpop.f32.mrf.mxu0 }
 0x66f   : > { %v1876_v19 = vadd.f32 %v2951_v1, %v3384_v47 }
 0x670   : > { %v1870_v2 = vpop.f32.mrf.mxu0 }
 0x671   : > { %v1871_v3 = vadd.f32 %v1870_v2, %v3389_v49  ;;  %v1882_v21 = vsel %vm1033_vm3, %v1876_v19, -inf }
 0x673   : > { %v1879_v4 = vsel %vm1033_vm3, %v1871_v3, -inf }
 0x67b   : > { %1620 = vrot.lane.b32.xlu1 %v3357_v38, %s3143_s16 }
 0x69f   : > { %1880 = vmax.xlane.f32.xlu1 %v1879_v4 }
 0x6f3   : > { %v1601_v5 = vpop.xlane.xlu1 %1600 }
 0x6f4   : > { %v1603_v6 = vsub.f32 %v1593_v60, %v1601_v5 }
 0x6f5   : > { %v1598_v7 = vpop.xlane.xlu0 %1597 }
 0x6f6   : > { %v1606_v8 = vmul.f32 1.442695, %v1603_v6  ;;  %v1602_v9 = vsub.f32 %v1588_v62, %v1598_v7 }
 0x6f7   : > { %v1621_v10 = vpop.permute.xlu1 %1620 }
 0x6f8   : > { %3064 = vpow2.f32 %v1606_v8  ;;  %v1604_v11 = vmul.f32 1.442695, %v1602_v9  ;;  %2933 = vmatprep.subr.mxu1 %v1621_v10 }
 0x6f9   : > { %2934 = vmatpush3.msra.mxu1 %v1621_v10  ;;  %v2130_v10 = vld [vmem:[%s3297_s28 + $0x18] sm:$0xff] }
 0x6fa   : > { %3066 = vpow2.f32 %v1604_v11  ;;  %v2129_v11 = vld [vmem:[%s3297_s28 + $0x10] sm:$0xff]  ;;  %2964 = vmatprep.subr.mxu0 %v2130_v10 }
 0x6fb   : > { %2965 = vmatpush3.msra.mxu0 %v2130_v10 }
 0x6fc   : > { %2966 = vmatprep.subr.mxu0 %v2129_v11 }
 0x6fd   : > { %2967 = vmatpush3.msra.mxu0 %v2129_v11 }
 0x705   : > { %v3065_v12 = vpop.eup %3064 }
 0x706   : > { %v1611_v13 = vsel %vm1033_vm3, %v3065_v12, 0.0 }
 0x707   : > { %v3067_v14 = vpop.eup %3066  ;;  %1612 = vadd.xlane.f32.xlu0 %v1611_v13  ;;  %v2127_v13 = vld [vmem:[%s3297_s28] sm:$0xff] }
 0x708   : > { %v1608_v49 = vsel %vm1033_vm3, %v3067_v14, 0.0 }
 0x70b   : > { %1609 = vadd.xlane.f32.xlu0 %v1608_v49 }
 0x721   : > { %1618 = vrot.lane.b32.xlu0 %v3359_v40, %s3143_s16  ;;  %s3636_s16 = scalar_lea.vmem %s3598_s11, %s3265_s23 }
 0x728   : > { %v1881_v15 = vpop.xlane.xlu1 %1880 }
 0x729   : > { %v1885_v16 = vsub.f32 %v1871_v3, %v1881_v15 }
 0x72b   : > { %v1887_v17 = vmul.f32 1.442695, %v1885_v16 }
 0x72d   : > { %3068 = vpow2.f32 %v1887_v17 }
 0x73a   : > { %v3069_v18 = vpop.eup %3068 }
 0x73b   : > { %v1891_v20 = vsel %vm1033_vm3, %v3069_v18, 0.0 }
 0x73c   : > { %1892 = vadd.xlane.f32.xlu1 %v1891_v20 }
 0x740   : > { %1883 = vmax.xlane.f32.xlu0 %v1882_v21 }
 0x74d   : > { %1903 = vrot.lane.b32.xlu1 %v3357_v38, %s3144_s6 }
 0x790   : > { %v1613_v22 = vpop.xlane.xlu0 %1612 }
 0x791   : > { %3070 = vrcp.f32 %v1613_v22 }
 0x794   : > { %v1610_v23 = vpop.xlane.xlu0 %1609 }
 0x795   : > { %3072 = vrcp.f32 %v1610_v23 }
 0x798   : > { %v1619_v24 = vpop.permute.xlu0 %1618 }
 0x799   : > { %2935 = vmatprep.subr.mxu1 %v1619_v24 }
 0x79a   : > { %2936 = vmatpush3.msra.mxu1 %v1619_v24 }
 0x79b   : > { %2940 = vmatprep.subr.mxu1 %v941_v25 }
 0x79e   : > { %v3071_v26 = vpop.eup %3070 }
 0x79f   : > { %v1617_v28 = vmul.f32 %v3071_v26, %v3065_v12  ;;  %v2128_v12 = vld [vmem:[%s3297_s28 + $0x8] sm:$0xff]  ;;  %s3634_s28 = scalar_lea.vmem %s3595_s8, %s3265_s23  ;;  %s3639_s23 = sld [smem:[#allocation14_spill]] (!%p2788_p5) }
 0x7a0   : > { %2968 = vmatprep.subr.mxu0 %v2128_v12  ;;  %v2778_v20 = vld [vmem:[%s3634_s28] ss:$0 sm:$0xff] }
 0x7a1   : > { %2969 = vmatpush3.msra.mxu0 %v2128_v12 }
 0x7a2   : > { %v3073_v47 = vpop.eup %3072  ;;  %2970 = vmatprep.subr.mxu0 %v2127_v13 }
 0x7a3   : > { %v1616_v27 = vmul.f32 %v3073_v47, %v3067_v14  ;;  %2971 = vmatpush3.msra.mxu0 %v2127_v13 }
 0x7a5   : > { %2937 = vmatprep.mubr.msk.f32.mxu1 %vm1033_vm3, %v1616_v27 }
 0x7a6   : > { %2938 = vmatmul.mubr.msk.f32.vlgmr.msra.gmra.mxu1 %vm1033_vm3, %v1617_v28  ;;  %v2244_v28 = vld [vmem:[%s3307_s20 + $0x38] sm:$0xff] }
 0x7a7   : > { %2941 = vmatpush3.msra.mxu1 %v941_v25  ;;  %v2779_v25 = vld [vmem:[%s3635_s30] ss:$0 sm:$0xff] }
 0x7c5   : > { %v1893_v29 = vpop.xlane.xlu1 %1892 }
 0x7c9   : > { %v1904_v38 = vpop.permute.xlu1 %1903  ;;  %v1884_v30 = vpop.xlane.xlu0 %1883 }
 0x7ca   : > { %v1886_v31 = vsub.f32 %v1876_v19, %v1884_v30  ;;  %2952 = vmatprep.subr.mxu1 %v1904_v38  ;;  %v2241_v30 = vld [vmem:[%s3307_s20 + $0x20] sm:$0xff] }
 0x7cc   : > { %v1889_v33 = vmul.f32 1.442695, %v1886_v31  ;;  %v2240_v31 = vld [vmem:[%s3307_s20 + $0x18] sm:$0xff] }
 0x7ce   : > { %3074 = vpow2.f32 %v1889_v33  ;;  %v2239_v33 = vld [vmem:[%s3307_s20 + $0x10] sm:$0xff] }
 0x7cf   : > { %3076 = vrcp.f32 %v1893_v29  ;;  %v2243_v29 = vld [vmem:[%s3307_s20 + $0x30] sm:$0xff] }
 0x7db   : > { %v3075_v34 = vpop.eup %3074 }
 0x7dc   : > { %v1894_v36 = vsel %vm1033_vm3, %v3075_v34, 0.0  ;;  %v3077_v37 = vpop.eup %3076 }
 0x7dd   : > { %1895 = vadd.xlane.f32.xlu0 %v1894_v36  ;;  %v1899_v43 = vmul.f32 %v3077_v37, %v3069_v18  ;;  %v2237_v36 = vld [vmem:[%s3307_s20] sm:$0xff] }
 0x7de   : > { %v2780_v37 = vld [vmem:[%s3636_s16] ss:$0 sm:$0xff]  ;;  %s3638_s16 = sld [smem:[#allocation15_spill]] (!%p2788_p5) }
 0x7f3   : > { %1901 = vrot.lane.b32.xlu0 %v3359_v40, %s3144_s6 }
 0x866   : > { %v2939_v39 = vpop.f32.mrf.mxu1  ;;  %v1896_v41 = vpop.xlane.xlu0 %1895 }
 0x867   : > { %3078 = vrcp.f32 %v1896_v41 }
 0x868   : > { %v1696_v42 = vpop.f32.mrf.mxu1 }
 0x869   : > { %2942 = vmatprep.mubr.msk.f32.mxu1 %vm949_vm2, %v1696_v42 }
 0x86a   : > { %2943 = vmatmul.mubr.msk.f32.vlgmr.msra.gmra.mxu1 %vm949_vm2, %v2939_v39  ;;  %v1902_v44 = vpop.permute.xlu0 %1901 }
 0x86b   : > { %2953 = vmatpush3.msra.mxu1 %v1904_v38  ;;  %2956 = vmatprep.mubr.msk.f32.mxu1 %vm1033_vm3, %v1899_v43  ;;  %v2242_v38 = vld [vmem:[%s3307_s20 + $0x28] sm:$0xff] }
 0x86c   : > { %2954 = vmatprep.subr.mxu1 %v1902_v44 }
 0x86d   : > { %2955 = vmatpush3.msra.mxu1 %v1902_v44 }
 0x86e   : > { %2959 = vmatprep.subr.mxu1 %v942_v46 }
 0x874   : > { %v3079_v40 = vpop.eup %3078 }
 0x875   : > { %v1900_v45 = vmul.f32 %v3079_v40, %v3075_v34  ;;  %v2238_v34 = vld [vmem:[%s3307_s20 + $0x8] sm:$0xff] }
 0x877   : > { %2957 = vmatmul.mubr.msk.f32.vlgmr.msra.gmra.mxu1 %vm1033_vm3, %v1900_v45 }
 0x878   : > { %2960 = vmatpush3.msra.mxu1 %v942_v46 }
 0x879   : > { %2975 = vmatprep.subr.mxu1 %v2244_v28 }
 0x92a   : > { %v2944_v48 = vpop.f32.mrf.mxu1 }
 0x92b   : > { %v1787_v50 = vadd.f32 %v2944_v48, %v3439_v56 }
 0x92c   : > { %v1777_v51 = vpop.f32.mrf.mxu1 }
 0x92d   : > { %v1786_v52 = vadd.f32 %v1777_v51, %v3441_v58 }
 0x937   : > { %v2958_v53 = vpop.f32.mrf.mxu1 }
 0x939   : > { %v1979_v54 = vpop.f32.mrf.mxu1 }
 0x93a   : > { %2961 = vmatprep.mubr.msk.f32.mxu1 %vm949_vm2, %v1979_v54 }
 0x93b   : > { %2962 = vmatmul.mubr.msk.f32.vlgmr.msra.gmra.mxu1 %vm949_vm2, %v2958_v53 }
 0x93c   : > { %2976 = vmatpush3.msra.mxu1 %v2244_v28 }
 0x93d   : > { %2977 = vmatprep.subr.mxu1 %v2243_v29 }
 0x93e   : > { %2978 = vmatpush3.msra.mxu1 %v2243_v29 }
 0x93f   : > { %2979 = vmatprep.subr.mxu1 %v2242_v38 }
 0x940   : > { %2980 = vmatpush3.msra.mxu1 %v2242_v38 }
 0x941   : > { %2981 = vmatprep.subr.mxu1 %v2241_v30 }
 0x942   : > { %2982 = vmatpush3.msra.mxu1 %v2241_v30 }
 0x943   : > { %2983 = vmatprep.subr.mxu1 %v2240_v31 }
 0x944   : > { %2984 = vmatpush3.msra.mxu1 %v2240_v31 }
 0x945   : > { %2985 = vmatprep.subr.mxu1 %v2239_v33 }
 0x946   : > { %2986 = vmatpush3.msra.mxu1 %v2239_v33 }
 0x947   : > { %2987 = vmatprep.subr.mxu1 %v2238_v34 }
 0x948   : > { %2988 = vmatpush3.msra.mxu1 %v2238_v34 }
 0x949   : > { %2989 = vmatprep.subr.mxu1 %v2237_v36 }
 0x94a   : > { %2990 = vmatpush3.msra.mxu1 %v2237_v36 }
 0x9fb   : > { %v2963_v55 = vpop.f32.mrf.mxu1 }
 0x9fc   : > { %v2070_v59 = vadd.f32 %v2963_v55, %v1787_v50 }
 0x9fd   : > { %v2060_v60 = vpop.f32.mrf.mxu1 }
 0x9fe   : > { %v2079_v61 = vadd.f32 %v2777_v57, %v2070_v59  ;;  %v2069_v62 = vadd.f32 %v2060_v60, %v1786_v52 }
 0xa00   : > { %v2078_v56 = vadd.f32 %v2777_v57, %v2069_v62  ;;  %v2081_v63 = vadd.f32 %v2079_v61, %v3348_v35 }
 0xa02   : > { %v2087_v58 = vsel %vm857_vm1, %v2081_v63, 0.0  ;;  %v2080_v0 = vadd.f32 %v2078_v56, %v3342_v32 }
 0xa03   : > { %2088 = vadd.xlane.f32.xlu0 %v2087_v58  ;;  %v2783_v58 = vld [vmem:[%s781_s2] ss:$0 sm:$0xff] }
 0xa04   : > { %v2084_v1 = vsel %vm857_vm1, %v2080_v0, 0.0 }
 0xa05   : > { %2085 = vadd.xlane.f32.xlu1 %v2084_v1 }
 0xa8c   : > { %v2089_v2 = vpop.xlane.xlu0 %2088 }
 0xa8d   : > { %v2092_v3 = vmul.f32 0.03125, %v2089_v2 }
 0xa8e   : > { %v2086_v4 = vpop.xlane.xlu1 %2085 }
 0xa8f   : > { %v2094_v5 = vsub.f32 %v2081_v63, %v2092_v3  ;;  %v2091_v6 = vmul.f32 0.03125, %v2086_v4 }
 0xa91   : > { %v2093_v7 = vsub.f32 %v2080_v0, %v2091_v6  ;;  %v2096_v8 = vmul.f32 %v2094_v5, %v2094_v5 }
 0xa93   : > { %v2100_v35 = vsel %vm857_vm1, %v2096_v8, 0.0  ;;  %v2095_v9 = vmul.f32 %v2093_v7, %v2093_v7 }
 0xa94   : > { %2101 = vadd.xlane.f32.xlu0 %v2100_v35 }
 0xa95   : > { %v2097_v32 = vsel %vm857_vm1, %v2095_v9, 0.0 }
 0xa96   : > { %2098 = vadd.xlane.f32.xlu1 %v2097_v32 }
 0xb1d   : > { %v2102_v14 = vpop.xlane.xlu0 %2101 }
 0xb1e   : > { %v2104_v49 = vmul.f32 0.03125, %v2102_v14 }
 0xb1f   : > { %v2099_v15 = vpop.xlane.xlu1 %2098 }
 0xb20   : > { %v2106_v16 = vadd.f32 1e-05, %v2104_v49  ;;  %v2103_v17 = vmul.f32 0.03125, %v2099_v15 }
 0xb22   : > { %3080 = vrsqrt.f32 %v2106_v16  ;;  %v2105_v18 = vadd.f32 1e-05, %v2103_v17 }
 0xb24   : > { %3082 = vrsqrt.f32 %v2105_v18 }
 0xb2f   : > { %v3081_v19 = vpop.eup %3080 }
 0xb30   : > { %v2110_v21 = vmul.f32 %v3081_v19, %v2094_v5 }
 0xb31   : > { %v3083_v22 = vpop.eup %3082 }
 0xb32   : > { %v2109_v23 = vmul.f32 %v3083_v22, %v2093_v7  ;;  %v2118_v24 = vmul.f32 %v2778_v20, %v2110_v21  ;;  %v2786_v22 = vld [vmem:[%s784_s26] ss:$0 sm:$0xff] }
 0xb34   : > { %v2117_v26 = vmul.f32 %v2778_v20, %v2109_v23  ;;  %v2126_v27 = vadd.f32 %v2779_v25, %v2118_v24 }
 0xb36   : > { %v3496_v47 = vadd.f32 %v2779_v25, %v2117_v26  ;;  %v2787_v25 = vld [vmem:[%s787_s18] ss:$0 sm:$0xff] }
 0xb38   : > { %2972 = vmatprep.mubr.msk.f32.mxu0 %vm857_vm1, %v3496_v47 }
 0xb39   : > { %2973 = vmatmul.mubr.msk.f32.vlgmr.msra.gmra.mxu0 %vm857_vm1, %v2126_v27 }
 0xbf9   : > { %v2974_v39 = vpop.f32.mrf.mxu0 }
 0xbfa   : > { %v2216_v41 = vadd.f32 %v2974_v39, %v2780_v37 }
 0xbfb   : > { %v2210_v42 = vpop.f32.mrf.mxu0 }
 0xbfc   : > { %v2222_v43 = vmul.f32 0.044715, %v2216_v41  ;;  %v2211_v44 = vadd.f32 %v2780_v37, %v2210_v42  ;;  %v2220_v62 = vmul.f32 0.5, %v2216_v41 }
 0xbfe   : > { %v2224_v40 = vmul.f32 %v2222_v43, %v2216_v41  ;;  %v2221_v45 = vmul.f32 0.044715, %v2211_v44  ;;  %v2219_v60 = vmul.f32 0.5, %v2211_v44 }
 0xc00   : > { %v2226_v46 = vmul.f32 %v2224_v40, %v2216_v41  ;;  %v2223_v48 = vmul.f32 %v2221_v45, %v2211_v44 }
 0xc02   : > { %v2228_v50 = vadd.f32 %v2226_v46, %v2216_v41  ;;  %v2225_v51 = vmul.f32 %v2223_v48, %v2211_v44 }
 0xc04   : > { %v2230_v52 = vmul.f32 0.7978846, %v2228_v50  ;;  %v2227_v53 = vadd.f32 %v2225_v51, %v2211_v44 }
 0xc06   : > { %3084 = vtanh.f32 %v2230_v52  ;;  %v2229_v54 = vmul.f32 0.7978846, %v2227_v53 }
 0xc08   : > { %3086 = vtanh.f32 %v2229_v54 }
 0xc13   : > { %v3085_v55 = vpop.eup %3084 }
 0xc14   : > { %v2234_v59 = vadd.f32 1.0, %v3085_v55 }
 0xc15   : > { %v3087_v57 = vpop.eup %3086 }
 0xc16   : > { %v2233_v61 = vadd.f32 1.0, %v3087_v57  ;;  %v2236_v63 = vmul.f32 %v2234_v59, %v2220_v62 }
 0xc18   : > { %v2235_v56 = vmul.f32 %v2233_v61, %v2219_v60 }
 0xc1a   : > { %2991 = vmatprep.mubr.msk.f32.mxu1 %vm2252_vm4, %v2235_v56 }
 0xc1b   : > { %2992 = vmatmul.mubr.msk.f32.vlgmr.msra.gmra.mxu1 %vm2252_vm4, %v2236_v63 }
 0xcdb   : > { %v2993_v0 = vpop.f32.mrf.mxu1 }
 0xcdc   : > { %v2331_v1 = vadd.f32 %v2993_v0, %v2783_v58 }
 0xcdd   : > { %v2325_v2 = vpop.f32.mrf.mxu1 }
 0xcde   : > { %v2326_v3 = vadd.f32 %v2783_v58, %v2325_v2  ;;  %v2335_v4 = vadd.f32 %v2331_v1, %v2126_v27 }
 0xce0   : > { %v2341_v5 = vsel %vm857_vm1, %v2335_v4, 0.0  ;;  %v2334_v6 = vadd.f32 %v2326_v3, %v3496_v47 }
 0xce1   : > { %2342 = vadd.xlane.f32.xlu0 %v2341_v5 }
 0xce2   : > { %v2338_v7 = vsel %vm857_vm1, %v2334_v6, 0.0 }
 0xce3   : > { %2339 = vadd.xlane.f32.xlu1 %v2338_v7 }
 0xd6a   : > { %v2343_v8 = vpop.xlane.xlu0 %2342 }
 0xd6b   : > { %v2345_v35 = vmul.f32 0.03125, %v2343_v8 }
 0xd6c   : > { %v2340_v9 = vpop.xlane.xlu1 %2339 }
 0xd6d   : > { %v2347_v32 = vsub.f32 %v2335_v4, %v2345_v35  ;;  %v2344_v10 = vmul.f32 0.03125, %v2340_v9 }
 0xd6f   : > { %v2346_v11 = vsub.f32 %v2334_v6, %v2344_v10  ;;  %v2349_v12 = vmul.f32 %v2347_v32, %v2347_v32 }
 0xd71   : > { %v2353_v13 = vsel %vm857_vm1, %v2349_v12, 0.0  ;;  %v2348_v14 = vmul.f32 %v2346_v11, %v2346_v11 }
 0xd72   : > { %2354 = vadd.xlane.f32.xlu0 %v2353_v13 }
 0xd73   : > { %v2350_v49 = vsel %vm857_vm1, %v2348_v14, 0.0 }
 0xd74   : > { %2351 = vadd.xlane.f32.xlu1 %v2350_v49 }
 0xdfb   : > { %v2355_v15 = vpop.xlane.xlu0 %2354 }
 0xdfc   : > { %v2357_v16 = vmul.f32 0.03125, %v2355_v15 }
 0xdfd   : > { %v2352_v17 = vpop.xlane.xlu1 %2351 }
 0xdfe   : > { %v2359_v18 = vadd.f32 1e-05, %v2357_v16  ;;  %v2356_v19 = vmul.f32 0.03125, %v2352_v17 }
 0xe00   : > { %3088 = vrsqrt.f32 %v2359_v18  ;;  %v2358_v20 = vadd.f32 1e-05, %v2356_v19 }
 0xe02   : > { %3090 = vrsqrt.f32 %v2358_v20 }
 0xe0d   : > { %v3089_v21 = vpop.eup %3088 }
 0xe0e   : > { %v2363_v23 = vmul.f32 %v3089_v21, %v2347_v32 }
 0xe0f   : > { %v3091_v24 = vpop.eup %3090 }
 0xe10   : > { %v2371_v26 = vmul.f32 %v2786_v22, %v2363_v23  ;;  %v2362_v47 = vmul.f32 %v3091_v24, %v2346_v11 }
 0xe12   : > { %v2379_v27 = vadd.f32 %v2787_v25, %v2371_v26  ;;  %v2370_v28 = vmul.f32 %v2786_v22, %v2362_v47  ;;  %2385 = sbr.rel (%p2788_p5) target bundleno = 4333 (0x10ed), region = 108 }
 0xe14   : > { %2381 = vst.msk [vmem:[#allocation2 + $0x8] sm:$0xff] %vm857_vm1, %v2379_v27  ;;  %v2378_v29 = vadd.f32 %v2787_v25, %v2370_v28 }
 0xe16   : > { %2380 = vst.msk [vmem:[#allocation2] sm:$0xff] %vm857_vm1, %v2378_v29 }
 0xe17   : > { %v2394_v38 = vld [vmem:[%s3637_s24 + $0x18] sm:$0xff]  ;;  %v3145_v30 = vmov 0.0   ;;  %v2393_v31 = vld [vmem:[%s3637_s24 + $0x10] sm:$0xff]  ;;  %vm3146_vm5 = vmmov 0   ;;  %v2387_v33 = vrot.slane %v2379_v27, 7  ;;  %v2392_v34 = vld [vmem:[%s3637_s24 + $0x8] sm:$0xff] }
 0xe18   : > { %2994 = vmatprep.subr.mxu0 %v3145_v30  ;;  %3002 = vmatprep.mubr.msk.f32.mxu0 %vm3146_vm5, %v3145_v30  ;;  %vm2389_vm6 = vcmask 1040384   ;;  %v2391_v36 = vld [vmem:[%s3637_s24] sm:$0xff]  ;;  %v2479_v39 = vld [vmem:[%s3638_s16 + $0x18] sm:$0xff]  ;;  %v2478_v41 = vld [vmem:[%s3638_s16 + $0x10] sm:$0xff]  ;;  %vm2560_vm7 = vcmask 17408  }
 0xe19   : > { %2995 = vmatpush3.msra.mxu0 %v2394_v38  ;;  %3005 = vmatprep.subr.mxu1 %v3145_v30  ;;  %v2390_v37 = vsel %vm2389_vm6, %v2378_v29, %v2387_v33  ;;  %v2477_v42 = vld [vmem:[%s3638_s16 + $0x8] sm:$0xff]  ;;  %v2476_v43 = vld [vmem:[%s3638_s16] sm:$0xff] }
 0xe1a   : > { %2996 = vmatprep.subr.mxu0 %v3145_v30  ;;  %3013 = vmatprep.mubr.msk.f32.mxu1 %vm3146_vm5, %v3145_v30  ;;  %v2789_v44 = vld [vmem:[%s3639_s23] ss:$0 sm:$0xff] }
 0xe1b   : > { %2997 = vmatpush3.msra.mxu0 %v2393_v31  ;;  %3006 = vmatpush3.msra.mxu1 %v2479_v39  ;;  %v2791_v50 = vld [vmem:[%s3640_s27] ss:$0 sm:$0xff] }
 0xe1c   : > { %2998 = vmatprep.subr.mxu0 %v3145_v30  ;;  %3007 = vmatprep.subr.mxu1 %v3145_v30 }
 0xe1d   : > { %2999 = vmatpush3.msra.mxu0 %v2392_v34  ;;  %3008 = vmatpush3.msra.mxu1 %v2478_v41 }
 0xe1e   : > { %3000 = vmatprep.subr.mxu0 %v3145_v30  ;;  %3009 = vmatprep.subr.mxu1 %v3145_v30 }
 0xe1f   : > { %3001 = vmatpush3.msra.mxu0 %v2391_v36  ;;  %3010 = vmatpush3.msra.mxu1 %v2477_v42 }
 0xe20   : > { %3003 = vmatmul.mubr.msk.f32.vlgmr.msra.gmra.mxu0 %vm857_vm1, %v2390_v37  ;;  %3011 = vmatprep.subr.mxu1 %v3145_v30 }
 0xe21   : > { %3012 = vmatpush3.msra.mxu1 %v2476_v43 }
 0xee0   : > { %v2471_v40 = vpop.f32.mrf.mxu0 }
 0xee1   : > { %v2472_v45 = vadd.f32 %v2789_v44, %v2471_v40 }
 0xee2   : > { %v3004_v46 = vpop.f32.mrf.mxu0 }
 0xee3   : > { %3092 = vtanh.f32 %v2472_v45 }
 0xef0   : > { %v3093_v48 = vpop.eup %3092 }
 0xef1   : > { %3014 = vmatmul.mubr.msk.f32.vlgmr.msra.gmra.mxu1 %vm857_vm1, %v3093_v48 }
 0xfb1   : > { %v2556_v51 = vpop.f32.mrf.mxu1 }
 0xfb2   : > { %v2557_v52 = vadd.f32 %v2791_v50, %v2556_v51 }
 0xfb3   : > { %v3015_v53 = vpop.f32.mrf.mxu1 }
 0xfb4   : > { %v2561_v54 = vsel %vm2560_vm7, %v2557_v52, -inf }
 0xfb5   : > { %2562 = vmax.xlane.f32.xlu0 %v2561_v54 }
0x103e   : > { %v2563_v55 = vpop.xlane.xlu0 %2562 }
0x103f   : > { %v2564_v57 = vsub.f32 %v2557_v52, %v2563_v55 }
0x1041   : > { %v2565_v59 = vmul.f32 1.442695, %v2564_v57 }
0x1043   : > { %3094 = vpow2.f32 %v2565_v59 }
0x1050   : > { %v3095_v60 = vpop.eup %3094 }
0x1051   : > { %v2567_v61 = vsel %vm2560_vm7, %v3095_v60, 0.0 }
0x1052   : > { %2568 = vadd.xlane.f32.xlu0 %v2567_v61 }
0x10db   : > { %v2569_v62 = vpop.xlane.xlu0 %2568 }
0x10dc   : > { %3096 = vrcp.f32 %v2569_v62 }
0x10e9   : > { %v3097_v56 = vpop.eup %3096 }
0x10ea   : > { %v2571_v63 = vmul.f32 %v3097_v56, %v3095_v60 }
0x10ec   : > { %2572 = vst.msk [vmem:[#allocation3] sm:$0x3] %vm2560_vm7, %v2571_v63 }
0x10ed PF: > { %p3020_p6 = scmp.eq.s32.totalorder %s3259_s22, 1  ;;  %s3147_s29 = smov [#allocation3]  }
0x10ee   : > { %s2580_s30 = sshll.u32 %s3147_s29, 4  ;;  %s2581_s30 = int_to_ptr.vmem [resolvable:$true] %s2580_s30 }
0x10ef   : > { %s3098_s4 = scalar_lea.vmem %s2581_s30, 32  ;;  %p3105_p10 = scmp.lt.s32.totalorder %s2581_s30, %s2581_s30 }
0x10f0   : > { %p3099_p7 = scmp.ne.s32.totalorder %s2581_s30, %s3098_s4  ;;  %p3106_p11 = scmp.lt.s32.totalorder %s3098_s4, %s3098_s4 }
0x10f2   : > { %p3100_p8 = pnand %p3099_p7, %p3020_p6  ;;  %p3107_p12 = por %p3106_p11, %p3105_p10 }
0x10f4   : > { %p3101_p9 = pneg %p3100_p8 }
0x10f6   : > { %p3108_p13 = pnand %p3107_p12, %p3101_p9 }
0x10f8   : > { %3111 = shalt.err (!%p3108_p13)
}
0x10f9   : > { %s3641_s6 = sld [smem:[#allocation17_spill]] }
0x10ff   : > { %3017 = dma.vmem_to_hbm [thread:$0]  (%p3020_p6), %s2581_s30, 32, %s3641_s6, [#allocation4]  }
0x1100   : > { %3127 = dma.done.wait (%p3020_p6), [#allocation4], 32  }
0x1101   : > { %3129 = vsyncadd (%p3020_p6), [#allocation4], 4294967264 }
0x1102 PF: > { %s3642_s2 = sld [smem:[#allocation6_spill]] }
0x1108   : > { %s31_s1 = sadd.s32 1, %s3642_s2  }
0x1109   : > { %p28_p0 = scmp.ge.s32.totalorder %s31_s1, 4  }
0x110b   :  { %30 = sbr.rel (!%p28_p0) target bundleno = 13 (0xd), region = 168 }
0x1110   :  { %2593 = vsyncpa [#allocation4], 1 }
0x1111   :  { %2595 = vsyncpa [#allocation4 + $0x1], 1 }

</bundles_post_ra>
